<compile_context>
chip_gen: v7x
topology: tpu7x:2x2x1
jax: 0.10.0
libtpu: 0.0.40
codegen_flags: <defaults>
</compile_context>

<pallas_src>
import functools

import jax
import jax.numpy as jnp
from jax import lax
from jax.experimental import pallas as pl
from jax.experimental.pallas import tpu as pltpu


# --------------------------------------------------------------------------- #
# helpers
# --------------------------------------------------------------------------- #
def _round_up(x, m):
    return ((x + m - 1) // m) * m


def _block_batch(B):
    """Return (TB, Bp): batch elements per grid step and padded batch size."""
    if B <= 8:
        return B, B
    TB = 8                      # review: TB ~ 8-32; 8 keeps VMEM tiny for any N
    return TB, _round_up(B, TB)


# Column permutation: row-major column order [x0,y0,z0, ..., x3,y3,z3] (the
# order pypose uses) -> coordinate-major order [x0..x3, y0..y3, z0..z3] used
# inside the kernel.  inv[3*j + c] = 4*c + j.
_COORD_MAJOR_INDEX = [0, 4, 8, 1, 5, 9, 2, 6, 10, 3, 7, 11]


# --------------------------------------------------------------------------- #
# Pallas kernel 1: Gram matrix M^T M (coordinate-major column order).
# --------------------------------------------------------------------------- #
def _mtm_kernel(kv_ref, pix_ref, alpha_ref, out_ref):
    # kv_ref:    SMEM (Bp*4,)  flattened per-batch [fu, fv, u0, v0]
    # pix_ref:   VMEM (TB, 2, Np)   row 0 = u, row 1 = v   (N on lanes)
    # alpha_ref: VMEM (TB, 4, Np)   zero-padded on the lane axis
    # out_ref:   VMEM (TB, 12, 12)  Gram in coordinate-major column order
    TB = out_ref.shape[0]
    base = pl.program_id(0) * TB
    dn = (((1,), (1,)), ((), ()))          # contract over the lane (point) axis

    for tb in range(TB):                   # short, fully unrolled batch loop
        off = (base + tb) * 4
        fu = kv_ref[off + 0]
        fv = kv_ref[off + 1]
        u0 = kv_ref[off + 2]
        v0 = kv_ref[off + 3]

        al = alpha_ref[tb]                 # (4, Np)
        u = pix_ref[tb, 0:1, :]            # (1, Np)
        v = pix_ref[tb, 1:2, :]            # (1, Np)
        zeros = jnp.zeros_like(al)

        # M^T in coordinate-major row order: rows 0-3 = x-part, 4-7 = y-part,
        # 8-11 = z-part.  Padded lanes have alpha == 0, so they contribute
        # nothing to the Gram (no explicit mask needed).
        mtu = jnp.concatenate([al * fu, zeros, al * (u0 - u)], axis=0)   # (12, Np)
        mtv = jnp.concatenate([zeros, al * fv, al * (v0 - v)], axis=0)   # (12, Np)

        gram = (lax.dot_general(mtu, mtu, dn, preferred_element_type=jnp.float32)
                + lax.dot_general(mtv, mtv, dn, preferred_element_type=jnp.float32))
        out_ref[tb] = gram


def compute_mtm(pixels, alpha, intrinsics):
    """Return M^T M with shape (B, 12, 12) in the canonical (row-major) order."""
    B, N, _ = pixels.shape
    Np = _round_up(N, 128)
    TB, Bp = _block_batch(B)
    pad_b, pad_n = Bp - B, Np - N

    pix_t = jnp.pad(jnp.swapaxes(pixels, -1, -2).astype(jnp.float32),
                    ((0, pad_b), (0, 0), (0, pad_n)))                 # (Bp, 2, Np)
    al_t = jnp.pad(jnp.swapaxes(alpha, -1, -2).astype(jnp.float32),
                   ((0, pad_b), (0, 0), (0, pad_n)))                  # (Bp, 4, Np)
    kvals = jnp.stack([intrinsics[..., 0, 0], intrinsics[..., 1, 1],
                       intrinsics[..., 0, 2], intrinsics[..., 1, 2]], axis=-1)
    kvals = jnp.pad(kvals.astype(jnp.float32), ((0, pad_b), (0, 0))).reshape(-1)

    mtm_perm = pl.pallas_call(
        _mtm_kernel,
        out_shape=jax.ShapeDtypeStruct((Bp, 12, 12), jnp.float32),
        grid=(Bp // TB,),
        in_specs=[pl.BlockSpec(memory_space=pltpu.MemorySpace.SMEM),  # intrinsics scalars
                  pl.BlockSpec((TB, 2, Np), lambda b: (b, 0, 0)),
                  pl.BlockSpec((TB, 4, Np), lambda b: (b, 0, 0))],
        out_specs=pl.BlockSpec((TB, 12, 12), lambda b: (b, 0, 0)),
        compiler_params=pltpu.CompilerParams(dimension_semantics=("parallel",)),
    )(kvals, pix_t, al_t)

    inv = jnp.asarray(_COORD_MAJOR_INDEX)
    return mtm_perm[:B][:, inv][:, :, inv]        # tiny XLA gather back to canonical order


# --------------------------------------------------------------------------- #
# Pallas kernel 2: _compute_scale for all K candidates of a batch element.
# --------------------------------------------------------------------------- #
def _scale_kernel(bases_ref, alpha_ref, pts_ref, transp_ref, scale_ref, *,
                  valid_n, eps):
    # bases_ref:  VMEM (TB, K, 3, 4)  camera control points, coordinate-major
    # alpha_ref:  VMEM (TB, 4, Np)    zero-padded on the lane axis
    # pts_ref:    VMEM (TB, 3, Np)    zero-padded on the lane axis
    # transp_ref: VMEM (TB, K, 3, Np) camera-frame points (lane-dense output)
    # scale_ref:  VMEM (TB, K, 1, 1)  signed scale (tiny store, negligible)
    TB, K = transp_ref.shape[0], transp_ref.shape[1]
    Np = transp_ref.shape[-1]
    inv_n = 1.0 / float(valid_n)
    lane = lax.broadcasted_iota(jnp.int32, (1, Np), 1)
    valid = lane < valid_n                                   # mask padded lanes

    for tb in range(TB):                                     # unrolled batch loop
        al = alpha_ref[tb]                                   # (4, Np)
        pts = pts_ref[tb]                                    # (3, Np)

        # world-point deviations (shared across all K candidates)
        cw = jnp.sum(pts, axis=1, keepdims=True) * inv_n     # (3, 1)
        dvw = pts - cw
        dw = jnp.sqrt(jnp.sum(dvw * dvw, axis=0, keepdims=True))   # (1, Np)

        for k in range(K):                                   # all candidates, one DMA
            bk = bases_ref[tb, k]                            # (3, 4)
            # transp = alpha @ bases, done as 4 lane-dense VPU FMAs per coord
            tr = (bk[:, 0:1] * al[0:1, :] + bk[:, 1:2] * al[1:2, :]
                  + bk[:, 2:3] * al[2:3, :] + bk[:, 3:4] * al[3:4, :])   # (3, Np)

            cc = jnp.sum(tr, axis=1, keepdims=True) * inv_n
            dvc = tr - cc
            dc = jnp.sqrt(jnp.sum(dvc * dvc, axis=0, keepdims=True))     # (1, Np)

            num = jnp.sum(jnp.where(valid, dc * dw, 0.0))
            den = jnp.sum(jnp.where(valid, dc * dc, 0.0))
            scale = num / (den + eps)                        # eps: no NaN on degenerate input

            sp = tr * scale
            zmin = jnp.min(jnp.where(valid, sp[2:3, :], jnp.float32(1e30)))
            sign = jnp.where(zmin < 0.0, jnp.float32(-1.0), jnp.float32(1.0))

            transp_ref[tb, k] = sign * sp
            scale_ref[tb, k] = jnp.reshape(sign * scale, (1, 1))


def compute_scale(bases_c, alpha, points, eps=1e-12):
    """bases_c: (K, B, 12) -> transp (K, B, N, 3), scale (K, B, 1)."""
    K, B, _ = bases_c.shape
    N = points.shape[-2]
    Np = _round_up(N, 128)
    TB, Bp = _block_batch(B)
    pad_b, pad_n = Bp - B, Np - N

    al_t = jnp.pad(jnp.swapaxes(alpha, -1, -2).astype(jnp.float32),
                   ((0, pad_b), (0, 0), (0, pad_n)))                  # (Bp, 4, Np)
    pt_t = jnp.pad(jnp.swapaxes(points, -1, -2).astype(jnp.float32),
                   ((0, pad_b), (0, 0), (0, pad_n)))                  # (Bp, 3, Np)
    # (K, B, 4, 3) -> (B, K, 3, 4): coordinates on sublanes, control index on lanes
    bases = jnp.transpose(bases_c.reshape(K, B, 4, 3), (1, 0, 3, 2)).astype(jnp.float32)
    bases = jnp.pad(bases, ((0, pad_b), (0, 0), (0, 0), (0, 0)))      # (Bp, K, 3, 4)

    kernel = functools.partial(_scale_kernel, valid_n=N, eps=eps)
    transp_t, scale_o = pl.pallas_call(
        kernel,
        out_shape=(jax.ShapeDtypeStruct((Bp, K, 3, Np), jnp.float32),
                   jax.ShapeDtypeStruct((Bp, K, 1, 1), jnp.float32)),
        grid=(Bp // TB,),
        in_specs=[pl.BlockSpec((TB, K, 3, 4), lambda b: (b, 0, 0, 0)),
                  pl.BlockSpec((TB, 4, Np), lambda b: (b, 0, 0)),
                  pl.BlockSpec((TB, 3, Np), lambda b: (b, 0, 0))],
        out_specs=(pl.BlockSpec((TB, K, 3, Np), lambda b: (b, 0, 0, 0)),
                   pl.BlockSpec((TB, K, 1, 1), lambda b: (b, 0, 0, 0))),
        compiler_params=pltpu.CompilerParams(dimension_semantics=("parallel",)),
    )(bases, al_t, pt_t)

    transp = jnp.transpose(transp_t[:B, :, :, :N], (1, 0, 3, 2))      # (K, B, N, 3)
    scale = jnp.transpose(scale_o[:B, :, 0, 0], (1, 0))[..., None]    # (K, B, 1)
    return transp, scale


# --------------------------------------------------------------------------- #
# Plain-JAX glue (small fixed-size linear algebra, selection).
# --------------------------------------------------------------------------- #
def cart2homo(x):
    return jnp.concatenate([x, jnp.ones(x.shape[:-1] + (1,), x.dtype)], axis=-1)


def svd_basis(points):
    center = jnp.mean(points, axis=-2, keepdims=True)
    translated = points - center
    cov = jnp.swapaxes(translated, -1, -2) @ translated
    _, s, vh = jnp.linalg.svd(cov)
    controls = center + jnp.sqrt(s)[..., None] * jnp.swapaxes(vh, -1, -2)
    return jnp.concatenate([center, controls], axis=-2)               # (..., 4, 3)


def compute_alpha(points, bases):
    ph = cart2homo(points)   # (B, N, 4)
    bh = cart2homo(bases)    # (B, 4, 4)
    sol = jnp.linalg.solve(jnp.swapaxes(bh, -1, -2), jnp.swapaxes(ph, -1, -2))
    return jnp.swapaxes(sol, -1, -2)                                  # (B, N, 4)


def compute_nullv(pixels, alpha, intrinsics, least=4):
    mtm = compute_mtm(pixels, alpha, intrinsics)                      # Pallas kernel
    _, vecs = jnp.linalg.eigh(mtm)                                    # ascending eigenvalues
    idx = jnp.arange(least - 1, -1, -1)                               # [3, 2, 1, 0]
    return jnp.swapaxes(vecs[..., idx], -1, -2)                       # (B, 4, 12)


def compute_lrho(nullv, bases):
    nv = nullv.reshape(nullv.shape[:-1] + (4, 3))                     # (B, 4, 4, 3)
    i = jnp.array([1, 2, 3, 2, 3, 3])
    j = jnp.array([0, 0, 0, 1, 1, 2])
    dv = nv[..., i, :] - nv[..., j, :]                                # (B, 4, 6, 3)
    a = jnp.array([0, 0, 1, 0, 1, 2, 0, 1, 2, 3])
    b = jnp.array([0, 1, 1, 2, 2, 2, 3, 3, 3, 3])
    dp = jnp.sum(dv[..., a, :, :] * dv[..., b, :, :], axis=-1)        # (B, 10, 6)
    m = jnp.array([1, 2, 1, 2, 2, 1, 2, 2, 2, 1], dtype=dp.dtype)
    L = jnp.swapaxes(dp, -1, -2) * m                                  # (B, 6, 10)
    rho = jnp.sum((bases[..., i, :] - bases[..., j, :]) ** 2, axis=-1)  # (B, 6)
    return L, rho


def _lstsq(A, b):
    return jnp.einsum('...ij,...j->...i', jnp.linalg.pinv(A), b)


def compute_betas(L, rho):
    batch = rho.shape[:-1]
    betas = jnp.zeros((4,) + batch + (4,), rho.dtype)
    betas = betas.at[0, ..., 3].set(1.0)

    S = _lstsq(L[..., jnp.array([5, 8, 9])], rho)
    betas = betas.at[1, ..., 2].set(jnp.sqrt(jnp.abs(S[..., 0])))
    betas = betas.at[1, ..., 3].set(jnp.sqrt(jnp.abs(S[..., 2]))
                                    * jnp.sign(S[..., 1]) * jnp.sign(S[..., 0]))

    S = _lstsq(L[..., jnp.array([2, 4, 7, 5, 8, 9])], rho)
    betas = betas.at[2, ..., 1].set(jnp.sqrt(jnp.abs(S[..., 0])))
    betas = betas.at[2, ..., 2].set(jnp.sqrt(jnp.abs(S[..., 3]))
                                    * jnp.sign(S[..., 1]) * jnp.sign(S[..., 0]))
    betas = betas.at[2, ..., 3].set(jnp.sqrt(jnp.abs(S[..., 5]))
                                    * jnp.sign(S[..., 2]) * jnp.sign(S[..., 0]))

    S = _lstsq(L, rho)
    betas = betas.at[3, ..., 0].set(jnp.sqrt(jnp.abs(S[..., 9]))
                                    * jnp.sign(S[..., 6]) * jnp.sign(S[..., 0]))
    betas = betas.at[3, ..., 1].set(jnp.sqrt(jnp.abs(S[..., 5]))
                                    * jnp.sign(S[..., 3]) * jnp.sign(S[..., 0]))
    betas = betas.at[3, ..., 2].set(jnp.sqrt(jnp.abs(S[..., 2]))
                                    * jnp.sign(S[..., 1]) * jnp.sign(S[..., 0]))
    betas = betas.at[3, ..., 3].set(jnp.sqrt(jnp.abs(S[..., 0])))
    return betas                                                      # (4, B, 4)


def quat_from_mat(R):
    m00, m01, m02 = R[..., 0, 0], R[..., 0, 1], R[..., 0, 2]
    m10, m11, m12 = R[..., 1, 0], R[..., 1, 1], R[..., 1, 2]
    m20, m21, m22 = R[..., 2, 0], R[..., 2, 1], R[..., 2, 2]
    qw = 0.5 * jnp.sqrt(jnp.maximum(1.0 + m00 + m11 + m22, 0.0))
    qx = 0.5 * jnp.sqrt(jnp.maximum(1.0 + m00 - m11 - m22, 0.0))
    qy = 0.5 * jnp.sqrt(jnp.maximum(1.0 - m00 + m11 - m22, 0.0))
    qz = 0.5 * jnp.sqrt(jnp.maximum(1.0 - m00 - m11 + m22, 0.0))
    qx = jnp.copysign(qx, m21 - m12)
    qy = jnp.copysign(qy, m02 - m20)
    qz = jnp.copysign(qz, m10 - m01)
    q = jnp.stack([qx, qy, qz, qw], axis=-1)
    return q / jnp.linalg.norm(q, axis=-1, keepdims=True)


def mat_from_quat(q):
    x, y, z, w = q[..., 0], q[..., 1], q[..., 2], q[..., 3]
    xx, yy, zz = x * x, y * y, z * z
    xy, xz, yz = x * y, x * z, y * z
    wx, wy, wz = w * x, w * y, w * z
    return jnp.stack([
        jnp.stack([1 - 2 * (yy + zz), 2 * (xy - wz), 2 * (xz + wy)], axis=-1),
        jnp.stack([2 * (xy + wz), 1 - 2 * (xx + zz), 2 * (yz - wx)], axis=-1),
        jnp.stack([2 * (xz - wy), 2 * (yz + wx), 1 - 2 * (xx + yy)], axis=-1),
    ], axis=-2)


def svdtf(source, target):
    cs = jnp.mean(source, axis=-2, keepdims=True)
    ct = jnp.mean(target, axis=-2, keepdims=True)
    sc = source - cs
    tc = target - ct
    H = jnp.swapaxes(sc, -1, -2) @ tc
    U, _, Vh = jnp.linalg.svd(H)
    V = jnp.swapaxes(Vh, -1, -2)
    Ut = jnp.swapaxes(U, -1, -2)
    d = jnp.sign(jnp.linalg.det(V @ Ut))
    D = jnp.concatenate([jnp.ones(d.shape + (2,), d.dtype), d[..., None]], axis=-1)
    R = (V * D[..., None, :]) @ Ut
    t = ct[..., 0, :] - jnp.einsum('...ij,...j->...i', R, cs[..., 0, :])
    return jnp.concatenate([t, quat_from_mat(R)], axis=-1)


def reprojerr(points, pixels, intrinsics, pose):
    R = mat_from_quat(pose[..., 3:])
    t = pose[..., :3]
    pc = jnp.einsum('...ij,...nj->...ni', R, points) + t[..., None, :]
    fu = intrinsics[..., 0, 0][..., None]
    u0 = intrinsics[..., 0, 2][..., None]
    fv = intrinsics[..., 1, 1][..., None]
    v0 = intrinsics[..., 1, 2][..., None]
    u = fu * pc[..., 0] / pc[..., 2] + u0
    v = fv * pc[..., 1] / pc[..., 2] + v0
    return jnp.sqrt((u - pixels[..., 0]) ** 2 + (v - pixels[..., 1]) ** 2)


def compute_solution(beta, nullv, alpha, points):
    nullvT = jnp.swapaxes(nullv, -1, -2)                              # (B, 12, 4)
    bases_c = jnp.matmul(nullvT, beta[..., None])[..., 0]             # (K,B,12) or (B,12)
    if bases_c.ndim == 2:
        transp, scale = compute_scale(bases_c[None], alpha, points)   # Pallas kernel (K=1)
        return svdtf(points, transp[0]), scale[0]
    transp, scale = compute_scale(bases_c, alpha, points)             # Pallas kernel (K=4)
    return svdtf(points, transp), scale


def best_solution(errors, poses, betas, scales):
    idx = jnp.argmin(jnp.mean(errors, axis=-1), axis=0)               # (B,)
    b = jnp.arange(idx.shape[0])
    return poses[idx, b], betas[idx, b], scales[idx, b]


def _beta_residual(beta, base_w, nullv):
    base_c = (nullv.T @ beta).reshape(4, 3)
    i = jnp.array([0, 0, 0, 1, 1, 2])
    j = jnp.array([1, 2, 3, 2, 3, 3])
    dist_c = jnp.linalg.norm(base_c[i] - base_c[j], axis=-1)
    dist_w = jnp.linalg.norm(base_w[i] - base_w[j], axis=-1)
    return dist_w - dist_c


def refine_beta(beta, nullv, base_w, steps=10):
    # TODO(synk): pypose uses GaussNewton + StopOnPlateau(steps=10, patience=3);
    # here a fixed-step Gauss-Newton loop with a pseudo-inverse (LSTSQ) solver.
    def gn_step(beta_b, base_w_b, nullv_b):
        r = _beta_residual(beta_b, base_w_b, nullv_b)
        J = jax.jacfwd(_beta_residual)(beta_b, base_w_b, nullv_b)
        return beta_b - jnp.linalg.pinv(J) @ r
    step = jax.vmap(gn_step)
    for _ in range(steps):
        beta = step(beta, base_w, nullv)
    return beta


def epnp_forward(points, pixels, intrinsics, refine=True):
    assert pixels.shape[-2] == points.shape[-2] >= 4
    batch = points.shape[:-2]
    intrinsics = jnp.broadcast_to(intrinsics, batch + (3, 3)).astype(points.dtype)
    bases = svd_basis(points)
    alpha = compute_alpha(points, bases)
    nullv = compute_nullv(pixels, alpha, intrinsics)
    L, rho = compute_lrho(nullv, bases)
    betas = compute_betas(L, rho)
    poses, scales = compute_solution(betas, nullv, alpha, points)
    errors = reprojerr(points, pixels, intrinsics, poses)
    pose, beta, scale = best_solution(errors, poses, betas, scales)
    if refine:
        beta = refine_beta(beta * scale, nullv, bases)
        pose, _ = compute_solution(beta, nullv, alpha, points)
    return pose                                                       # (B, 7) SE3


# --------------------------------------------------------------------------- #
# XLA reference for the M^T M kernel (validation only).
# --------------------------------------------------------------------------- #
def _mtm_xla_reference(pixels, alpha, intrinsics):
    u, v = pixels[..., 0], pixels[..., 1]
    fu, u0 = intrinsics[..., 0, 0, None], intrinsics[..., 0, 2, None]
    fv, v0 = intrinsics[..., 1, 1, None], intrinsics[..., 1, 2, None]
    a0, a1, a2, a3 = alpha[..., 0], alpha[..., 1], alpha[..., 2], alpha[..., 3]
    O = jnp.zeros_like(a0)
    M = jnp.stack([a0 * fu, O, a0 * (u0 - u), a1 * fu, O, a1 * (u0 - u),
                   a2 * fu, O, a2 * (u0 - u), a3 * fu, O, a3 * (u0 - u),
                   O, a0 * fv, a0 * (v0 - v), O, a1 * fv, a1 * (v0 - v),
                   O, a2 * fv, a2 * (v0 - v), O, a3 * fv, a3 * (v0 - v)], axis=-1)
    M = M.reshape(pixels.shape[:-2] + (pixels.shape[-2] * 2, 12))
    return jnp.swapaxes(M, -1, -2) @ M


# --------------------------------------------------------------------------- #
if __name__ == "__main__":
    key = jax.random.PRNGKey(0)
    B, N = 8, 32
    points = jax.random.uniform(key, (B, N, 3), jnp.float32, -1.0, 1.0)

    # ground-truth camera poses (rotation about y + translation with positive depth)
    ang = jnp.linspace(-0.4, 0.4, B).astype(jnp.float32)
    ca, sa = jnp.cos(ang), jnp.sin(ang)
    z = jnp.zeros_like(ca)
    o = jnp.ones_like(ca)
    R_gt = jnp.stack([jnp.stack([ca, z, sa], -1),
                      jnp.stack([z, o, z], -1),
                      jnp.stack([-sa, z, ca], -1)], axis=-2)          # (B, 3, 3)
    t_gt = jnp.stack([jnp.linspace(-0.3, 0.3, B),
                      jnp.linspace(0.2, -0.2, B),
                      jnp.linspace(4.0, 8.0, B)], axis=-1).astype(jnp.float32)
    pc = jnp.einsum('bij,bnj->bni', R_gt, points) + t_gt[:, None, :]

    f, cx, cy = 100.0, 64.0, 48.0
    intrinsics = jnp.array([[f, 0.0, cx], [0.0, f, cy], [0.0, 0.0, 1.0]], jnp.float32)
    intrinsics = jnp.broadcast_to(intrinsics, (B, 3, 3))
    pixels = jnp.stack([f * pc[..., 0] / pc[..., 2] + cx,
                        f * pc[..., 1] / pc[..., 2] + cy], axis=-1)

    # --- sanity check: Pallas Gram kernel vs XLA reference ------------------ #
    bases_w = svd_basis(points)
    alpha_w = compute_alpha(points, bases_w)
    mtm_ref = _mtm_xla_reference(pixels, alpha_w, intrinsics)
    mtm_pl = compute_mtm(pixels, alpha_w, intrinsics)
    mtm_pl = jax.block_until_ready(mtm_pl)
    scale_ref = float(jnp.max(jnp.abs(mtm_ref)))
    err = float(jnp.max(jnp.abs(mtm_pl - mtm_ref)))
    assert err <= 1e-3 * scale_ref + 1e-3, f"MtM mismatch: {err} (scale {scale_ref})"

    # --- full forward pass --------------------------------------------------- #
    pose = epnp_forward(points, pixels, intrinsics, refine=True)
    pose = jax.block_until_ready(pose)
    assert pose.shape == (B, 7)
    rpe = float(jnp.mean(reprojerr(points, pixels, intrinsics, pose)))
    assert rpe < 2.0, f"reprojection error too large: {rpe}"

    print("KERNEL_OK")
</pallas_src>

<mosaic_0001>
module attributes {stable_mosaic.version = 11 : i64} {
  func.func @_mtm_kernel(%arg0: i32, %arg1: memref<32xf32, #tpu.memory_space<smem>>, %arg2: memref<8x2x128xf32, #tpu.memory_space<vmem>>, %arg3: memref<8x4x128xf32, #tpu.memory_space<vmem>>, %arg4: memref<8x12x12xf32, #tpu.memory_space<vmem>>) attributes {dimension_semantics = [#tpu.dimension_semantics<parallel>], iteration_bounds = array<i64: 1>, scalar_prefetch = 0 : i64, scratch_operands = 0 : i64, tpu.core_type = #tpu.core_type<tc>, window_params = [{transform_indices = @transform_0, window_bounds = array<i64: 32>}, {transform_indices = @transform_1, window_bounds = array<i64: 8, 2, 128>}, {transform_indices = @transform_2, window_bounds = array<i64: 8, 4, 128>}, {transform_indices = @transform_3, window_bounds = array<i64: 8, 12, 12>}]} {
    %c8_i32 = arith.constant 8 : i32
    %0 = arith.muli %arg0, %c8_i32 : i32
    %c0_i32 = arith.constant 0 : i32
    %1 = arith.addi %0, %c0_i32 : i32
    %c4_i32 = arith.constant 4 : i32
    %2 = arith.muli %1, %c4_i32 : i32
    %c0_i32_0 = arith.constant 0 : i32
    %3 = arith.addi %2, %c0_i32_0 : i32
    %4 = arith.index_cast %3 : i32 to index
    %5 = memref.load %arg1[%4] : memref<32xf32, #tpu.memory_space<smem>>
    %c1_i32 = arith.constant 1 : i32
    %6 = arith.addi %2, %c1_i32 : i32
    %7 = arith.index_cast %6 : i32 to index
    %8 = memref.load %arg1[%7] : memref<32xf32, #tpu.memory_space<smem>>
    %c2_i32 = arith.constant 2 : i32
    %9 = arith.addi %2, %c2_i32 : i32
    %10 = arith.index_cast %9 : i32 to index
    %11 = memref.load %arg1[%10] : memref<32xf32, #tpu.memory_space<smem>>
    %c3_i32 = arith.constant 3 : i32
    %12 = arith.addi %2, %c3_i32 : i32
    %13 = arith.index_cast %12 : i32 to index
    %14 = memref.load %arg1[%13] : memref<32xf32, #tpu.memory_space<smem>>
    %c0 = arith.constant 0 : index
    %c0_1 = arith.constant 0 : index
    %c0_2 = arith.constant 0 : index
    %15 = vector.load %arg3[%c0, %c0_1, %c0_2] : memref<8x4x128xf32, #tpu.memory_space<vmem>>, vector<1x4x128xf32>
    %16 = vector.shape_cast %15 : vector<1x4x128xf32> to vector<4x128xf32>
    %c0_3 = arith.constant 0 : index
    %c0_4 = arith.constant 0 : index
    %c0_5 = arith.constant 0 : index
    %17 = vector.load %arg2[%c0_3, %c0_4, %c0_5] : memref<8x2x128xf32, #tpu.memory_space<vmem>>, vector<1x1x128xf32>
    %18 = vector.shape_cast %17 : vector<1x1x128xf32> to vector<1x128xf32>
    %c0_6 = arith.constant 0 : index
    %c1 = arith.constant 1 : index
    %c0_7 = arith.constant 0 : index
    %19 = vector.load %arg2[%c0_6, %c1, %c0_7] : memref<8x2x128xf32, #tpu.memory_space<vmem>>, vector<1x1x128xf32>
    %20 = vector.shape_cast %19 : vector<1x1x128xf32> to vector<1x128xf32>
    %cst = arith.constant 0.000000e+00 : f32
    %21 = vector.broadcast %cst : f32 to vector<4x128xf32>
    %22 = vector.broadcast %5 : f32 to vector<4x128xf32>
    %23 = arith.mulf %16, %22 : vector<4x128xf32>
    %24 = vector.broadcast %11 : f32 to vector<1x128xf32>
    %25 = arith.subf %24, %18 : vector<1x128xf32>
    %26 = vector.broadcast %25 : vector<1x128xf32> to vector<4x128xf32>
    %27 = arith.mulf %16, %26 : vector<4x128xf32>
    %28 = tpu.concatenate %23, %21, %27 in 0 : vector<4x128xf32>, vector<4x128xf32>, vector<4x128xf32> -> vector<12x128xf32>
    %29 = vector.broadcast %8 : f32 to vector<4x128xf32>
    %30 = arith.mulf %16, %29 : vector<4x128xf32>
    %31 = vector.broadcast %14 : f32 to vector<1x128xf32>
    %32 = arith.subf %31, %20 : vector<1x128xf32>
    %33 = vector.broadcast %32 : vector<1x128xf32> to vector<4x128xf32>
    %34 = arith.mulf %16, %33 : vector<4x128xf32>
    %35 = tpu.concatenate %21, %30, %34 in 0 : vector<4x128xf32>, vector<4x128xf32>, vector<4x128xf32> -> vector<12x128xf32>
    %cst_8 = arith.constant dense<0.000000e+00> : vector<12x12xf32>
    %36 = tpu.matmul %28, %28, %cst_8 {dimension_numbers = #tpu.dot_dimension_numbers<[1], [1], [0], [0], [0, 0, 1, 0], [], []>} : vector<12x128xf32>, vector<12x128xf32>, vector<12x12xf32> -> vector<12x12xf32>
    %cst_9 = arith.constant dense<0.000000e+00> : vector<12x12xf32>
    %37 = tpu.matmul %35, %35, %cst_9 {dimension_numbers = #tpu.dot_dimension_numbers<[1], [1], [0], [0], [0, 0, 1, 0], [], []>} : vector<12x128xf32>, vector<12x128xf32>, vector<12x12xf32> -> vector<12x12xf32>
    %38 = arith.addf %36, %37 : vector<12x12xf32>
    %c0_10 = arith.constant 0 : index
    %c0_11 = arith.constant 0 : index
    %c0_12 = arith.constant 0 : index
    %39 = vector.load %arg4[%c0_10, %c0_11, %c0_12] : memref<8x12x12xf32, #tpu.memory_space<vmem>>, vector<1x12x12xf32>
    %40 = vector.shape_cast %39 : vector<1x12x12xf32> to vector<12x12xf32>
    %41 = vector.shape_cast %38 : vector<12x12xf32> to vector<1x12x12xf32>
    tpu.vector_store %arg4[%c0_10, %c0_11, %c0_12], %41 {strides = array<i32>} : memref<8x12x12xf32, #tpu.memory_space<vmem>>, vector<1x12x12xf32>,
    %c1_i32_13 = arith.constant 1 : i32
    %42 = arith.addi %0, %c1_i32_13 : i32
    %c4_i32_14 = arith.constant 4 : i32
    %43 = arith.muli %42, %c4_i32_14 : i32
    %c0_i32_15 = arith.constant 0 : i32
    %44 = arith.addi %43, %c0_i32_15 : i32
    %45 = arith.index_cast %44 : i32 to index
    %46 = memref.load %arg1[%45] : memref<32xf32, #tpu.memory_space<smem>>
    %c1_i32_16 = arith.constant 1 : i32
    %47 = arith.addi %43, %c1_i32_16 : i32
    %48 = arith.index_cast %47 : i32 to index
    %49 = memref.load %arg1[%48] : memref<32xf32, #tpu.memory_space<smem>>
    %c2_i32_17 = arith.constant 2 : i32
    %50 = arith.addi %43, %c2_i32_17 : i32
    %51 = arith.index_cast %50 : i32 to index
    %52 = memref.load %arg1[%51] : memref<32xf32, #tpu.memory_space<smem>>
    %c3_i32_18 = arith.constant 3 : i32
    %53 = arith.addi %43, %c3_i32_18 : i32
    %54 = arith.index_cast %53 : i32 to index
    %55 = memref.load %arg1[%54] : memref<32xf32, #tpu.memory_space<smem>>
    %c1_19 = arith.constant 1 : index
    %c0_20 = arith.constant 0 : index
    %c0_21 = arith.constant 0 : index
    %56 = vector.load %arg3[%c1_19, %c0_20, %c0_21] : memref<8x4x128xf32, #tpu.memory_space<vmem>>, vector<1x4x128xf32>
    %57 = vector.shape_cast %56 : vector<1x4x128xf32> to vector<4x128xf32>
    %c1_22 = arith.constant 1 : index
    %c0_23 = arith.constant 0 : index
    %c0_24 = arith.constant 0 : index
    %58 = vector.load %arg2[%c1_22, %c0_23, %c0_24] : memref<8x2x128xf32, #tpu.memory_space<vmem>>, vector<1x1x128xf32>
    %59 = vector.shape_cast %58 : vector<1x1x128xf32> to vector<1x128xf32>
    %c1_25 = arith.constant 1 : index
    %c1_26 = arith.constant 1 : index
    %c0_27 = arith.constant 0 : index
    %60 = vector.load %arg2[%c1_25, %c1_26, %c0_27] : memref<8x2x128xf32, #tpu.memory_space<vmem>>, vector<1x1x128xf32>
    %61 = vector.shape_cast %60 : vector<1x1x128xf32> to vector<1x128xf32>
    %cst_28 = arith.constant 0.000000e+00 : f32
    %62 = vector.broadcast %cst_28 : f32 to vector<4x128xf32>
    %63 = vector.broadcast %46 : f32 to vector<4x128xf32>
    %64 = arith.mulf %57, %63 : vector<4x128xf32>
    %65 = vector.broadcast %52 : f32 to vector<1x128xf32>
    %66 = arith.subf %65, %59 : vector<1x128xf32>
    %67 = vector.broadcast %66 : vector<1x128xf32> to vector<4x128xf32>
    %68 = arith.mulf %57, %67 : vector<4x128xf32>
    %69 = tpu.concatenate %64, %62, %68 in 0 : vector<4x128xf32>, vector<4x128xf32>, vector<4x128xf32> -> vector<12x128xf32>
    %70 = vector.broadcast %49 : f32 to vector<4x128xf32>
    %71 = arith.mulf %57, %70 : vector<4x128xf32>
    %72 = vector.broadcast %55 : f32 to vector<1x128xf32>
    %73 = arith.subf %72, %61 : vector<1x128xf32>
    %74 = vector.broadcast %73 : vector<1x128xf32> to vector<4x128xf32>
    %75 = arith.mulf %57, %74 : vector<4x128xf32>
    %76 = tpu.concatenate %62, %71, %75 in 0 : vector<4x128xf32>, vector<4x128xf32>, vector<4x128xf32> -> vector<12x128xf32>
    %cst_29 = arith.constant dense<0.000000e+00> : vector<12x12xf32>
    %77 = tpu.matmul %69, %69, %cst_29 {dimension_numbers = #tpu.dot_dimension_numbers<[1], [1], [0], [0], [0, 0, 1, 0], [], []>} : vector<12x128xf32>, vector<12x128xf32>, vector<12x12xf32> -> vector<12x12xf32>
    %cst_30 = arith.constant dense<0.000000e+00> : vector<12x12xf32>
    %78 = tpu.matmul %76, %76, %cst_30 {dimension_numbers = #tpu.dot_dimension_numbers<[1], [1], [0], [0], [0, 0, 1, 0], [], []>} : vector<12x128xf32>, vector<12x128xf32>, vector<12x12xf32> -> vector<12x12xf32>
    %79 = arith.addf %77, %78 : vector<12x12xf32>
    %c1_31 = arith.constant 1 : index
    %c0_32 = arith.constant 0 : index
    %c0_33 = arith.constant 0 : index
    %80 = vector.load %arg4[%c1_31, %c0_32, %c0_33] : memref<8x12x12xf32, #tpu.memory_space<vmem>>, vector<1x12x12xf32>
    %81 = vector.shape_cast %80 : vector<1x12x12xf32> to vector<12x12xf32>
    %82 = vector.shape_cast %79 : vector<12x12xf32> to vector<1x12x12xf32>
    tpu.vector_store %arg4[%c1_31, %c0_32, %c0_33], %82 {strides = array<i32>} : memref<8x12x12xf32, #tpu.memory_space<vmem>>, vector<1x12x12xf32>,
    %c2_i32_34 = arith.constant 2 : i32
    %83 = arith.addi %0, %c2_i32_34 : i32
    %c4_i32_35 = arith.constant 4 : i32
    %84 = arith.muli %83, %c4_i32_35 : i32
    %c0_i32_36 = arith.constant 0 : i32
    %85 = arith.addi %84, %c0_i32_36 : i32
    %86 = arith.index_cast %85 : i32 to index
    %87 = memref.load %arg1[%86] : memref<32xf32, #tpu.memory_space<smem>>
    %c1_i32_37 = arith.constant 1 : i32
    %88 = arith.addi %84, %c1_i32_37 : i32
    %89 = arith.index_cast %88 : i32 to index
    %90 = memref.load %arg1[%89] : memref<32xf32, #tpu.memory_space<smem>>
    %c2_i32_38 = arith.constant 2 : i32
    %91 = arith.addi %84, %c2_i32_38 : i32
    %92 = arith.index_cast %91 : i32 to index
    %93 = memref.load %arg1[%92] : memref<32xf32, #tpu.memory_space<smem>>
    %c3_i32_39 = arith.constant 3 : i32
    %94 = arith.addi %84, %c3_i32_39 : i32
    %95 = arith.index_cast %94 : i32 to index
    %96 = memref.load %arg1[%95] : memref<32xf32, #tpu.memory_space<smem>>
    %c2 = arith.constant 2 : index
    %c0_40 = arith.constant 0 : index
    %c0_41 = arith.constant 0 : index
    %97 = vector.load %arg3[%c2, %c0_40, %c0_41] : memref<8x4x128xf32, #tpu.memory_space<vmem>>, vector<1x4x128xf32>
    %98 = vector.shape_cast %97 : vector<1x4x128xf32> to vector<4x128xf32>
    %c2_42 = arith.constant 2 : index
    %c0_43 = arith.constant 0 : index
    %c0_44 = arith.constant 0 : index
    %99 = vector.load %arg2[%c2_42, %c0_43, %c0_44] : memref<8x2x128xf32, #tpu.memory_space<vmem>>, vector<1x1x128xf32>
    %100 = vector.shape_cast %99 : vector<1x1x128xf32> to vector<1x128xf32>
    %c2_45 = arith.constant 2 : index
    %c1_46 = arith.constant 1 : index
    %c0_47 = arith.constant 0 : index
    %101 = vector.load %arg2[%c2_45, %c1_46, %c0_47] : memref<8x2x128xf32, #tpu.memory_space<vmem>>, vector<1x1x128xf32>
    %102 = vector.shape_cast %101 : vector<1x1x128xf32> to vector<1x128xf32>
    %cst_48 = arith.constant 0.000000e+00 : f32
    %103 = vector.broadcast %cst_48 : f32 to vector<4x128xf32>
    %104 = vector.broadcast %87 : f32 to vector<4x128xf32>
    %105 = arith.mulf %98, %104 : vector<4x128xf32>
    %106 = vector.broadcast %93 : f32 to vector<1x128xf32>
    %107 = arith.subf %106, %100 : vector<1x128xf32>
    %108 = vector.broadcast %107 : vector<1x128xf32> to vector<4x128xf32>
    %109 = arith.mulf %98, %108 : vector<4x128xf32>
    %110 = tpu.concatenate %105, %103, %109 in 0 : vector<4x128xf32>, vector<4x128xf32>, vector<4x128xf32> -> vector<12x128xf32>
    %111 = vector.broadcast %90 : f32 to vector<4x128xf32>
    %112 = arith.mulf %98, %111 : vector<4x128xf32>
    %113 = vector.broadcast %96 : f32 to vector<1x128xf32>
    %114 = arith.subf %113, %102 : vector<1x128xf32>
    %115 = vector.broadcast %114 : vector<1x128xf32> to vector<4x128xf32>
    %116 = arith.mulf %98, %115 : vector<4x128xf32>
    %117 = tpu.concatenate %103, %112, %116 in 0 : vector<4x128xf32>, vector<4x128xf32>, vector<4x128xf32> -> vector<12x128xf32>
    %cst_49 = arith.constant dense<0.000000e+00> : vector<12x12xf32>
    %118 = tpu.matmul %110, %110, %cst_49 {dimension_numbers = #tpu.dot_dimension_numbers<[1], [1], [0], [0], [0, 0, 1, 0], [], []>} : vector<12x128xf32>, vector<12x128xf32>, vector<12x12xf32> -> vector<12x12xf32>
    %cst_50 = arith.constant dense<0.000000e+00> : vector<12x12xf32>
    %119 = tpu.matmul %117, %117, %cst_50 {dimension_numbers = #tpu.dot_dimension_numbers<[1], [1], [0], [0], [0, 0, 1, 0], [], []>} : vector<12x128xf32>, vector<12x128xf32>, vector<12x12xf32> -> vector<12x12xf32>
    %120 = arith.addf %118, %119 : vector<12x12xf32>
    %c2_51 = arith.constant 2 : index
    %c0_52 = arith.constant 0 : index
    %c0_53 = arith.constant 0 : index
    %121 = vector.load %arg4[%c2_51, %c0_52, %c0_53] : memref<8x12x12xf32, #tpu.memory_space<vmem>>, vector<1x12x12xf32>
    %122 = vector.shape_cast %121 : vector<1x12x12xf32> to vector<12x12xf32>
    %123 = vector.shape_cast %120 : vector<12x12xf32> to vector<1x12x12xf32>
    tpu.vector_store %arg4[%c2_51, %c0_52, %c0_53], %123 {strides = array<i32>} : memref<8x12x12xf32, #tpu.memory_space<vmem>>, vector<1x12x12xf32>,
    %c3_i32_54 = arith.constant 3 : i32
    %124 = arith.addi %0, %c3_i32_54 : i32
    %c4_i32_55 = arith.constant 4 : i32
    %125 = arith.muli %124, %c4_i32_55 : i32
    %c0_i32_56 = arith.constant 0 : i32
    %126 = arith.addi %125, %c0_i32_56 : i32
    %127 = arith.index_cast %126 : i32 to index
    %128 = memref.load %arg1[%127] : memref<32xf32, #tpu.memory_space<smem>>
    %c1_i32_57 = arith.constant 1 : i32
    %129 = arith.addi %125, %c1_i32_57 : i32
    %130 = arith.index_cast %129 : i32 to index
    %131 = memref.load %arg1[%130] : memref<32xf32, #tpu.memory_space<smem>>
    %c2_i32_58 = arith.constant 2 : i32
    %132 = arith.addi %125, %c2_i32_58 : i32
    %133 = arith.index_cast %132 : i32 to index
    %134 = memref.load %arg1[%133] : memref<32xf32, #tpu.memory_space<smem>>
    %c3_i32_59 = arith.constant 3 : i32
    %135 = arith.addi %125, %c3_i32_59 : i32
    %136 = arith.index_cast %135 : i32 to index
    %137 = memref.load %arg1[%136] : memref<32xf32, #tpu.memory_space<smem>>
    %c3 = arith.constant 3 : index
    %c0_60 = arith.constant 0 : index
    %c0_61 = arith.constant 0 : index
    %138 = vector.load %arg3[%c3, %c0_60, %c0_61] : memref<8x4x128xf32, #tpu.memory_space<vmem>>, vector<1x4x128xf32>
    %139 = vector.shape_cast %138 : vector<1x4x128xf32> to vector<4x128xf32>
    %c3_62 = arith.constant 3 : index
    %c0_63 = arith.constant 0 : index
    %c0_64 = arith.constant 0 : index
    %140 = vector.load %arg2[%c3_62, %c0_63, %c0_64] : memref<8x2x128xf32, #tpu.memory_space<vmem>>, vector<1x1x128xf32>
    %141 = vector.shape_cast %140 : vector<1x1x128xf32> to vector<1x128xf32>
    %c3_65 = arith.constant 3 : index
    %c1_66 = arith.constant 1 : index
    %c0_67 = arith.constant 0 : index
    %142 = vector.load %arg2[%c3_65, %c1_66, %c0_67] : memref<8x2x128xf32, #tpu.memory_space<vmem>>, vector<1x1x128xf32>
    %143 = vector.shape_cast %142 : vector<1x1x128xf32> to vector<1x128xf32>
    %cst_68 = arith.constant 0.000000e+00 : f32
    %144 = vector.broadcast %cst_68 : f32 to vector<4x128xf32>
    %145 = vector.broadcast %128 : f32 to vector<4x128xf32>
    %146 = arith.mulf %139, %145 : vector<4x128xf32>
    %147 = vector.broadcast %134 : f32 to vector<1x128xf32>
    %148 = arith.subf %147, %141 : vector<1x128xf32>
    %149 = vector.broadcast %148 : vector<1x128xf32> to vector<4x128xf32>
    %150 = arith.mulf %139, %149 : vector<4x128xf32>
    %151 = tpu.concatenate %146, %144, %150 in 0 : vector<4x128xf32>, vector<4x128xf32>, vector<4x128xf32> -> vector<12x128xf32>
    %152 = vector.broadcast %131 : f32 to vector<4x128xf32>
    %153 = arith.mulf %139, %152 : vector<4x128xf32>
    %154 = vector.broadcast %137 : f32 to vector<1x128xf32>
    %155 = arith.subf %154, %143 : vector<1x128xf32>
    %156 = vector.broadcast %155 : vector<1x128xf32> to vector<4x128xf32>
    %157 = arith.mulf %139, %156 : vector<4x128xf32>
    %158 = tpu.concatenate %144, %153, %157 in 0 : vector<4x128xf32>, vector<4x128xf32>, vector<4x128xf32> -> vector<12x128xf32>
    %cst_69 = arith.constant dense<0.000000e+00> : vector<12x12xf32>
    %159 = tpu.matmul %151, %151, %cst_69 {dimension_numbers = #tpu.dot_dimension_numbers<[1], [1], [0], [0], [0, 0, 1, 0], [], []>} : vector<12x128xf32>, vector<12x128xf32>, vector<12x12xf32> -> vector<12x12xf32>
    %cst_70 = arith.constant dense<0.000000e+00> : vector<12x12xf32>
    %160 = tpu.matmul %158, %158, %cst_70 {dimension_numbers = #tpu.dot_dimension_numbers<[1], [1], [0], [0], [0, 0, 1, 0], [], []>} : vector<12x128xf32>, vector<12x128xf32>, vector<12x12xf32> -> vector<12x12xf32>
    %161 = arith.addf %159, %160 : vector<12x12xf32>
    %c3_71 = arith.constant 3 : index
    %c0_72 = arith.constant 0 : index
    %c0_73 = arith.constant 0 : index
    %162 = vector.load %arg4[%c3_71, %c0_72, %c0_73] : memref<8x12x12xf32, #tpu.memory_space<vmem>>, vector<1x12x12xf32>
    %163 = vector.shape_cast %162 : vector<1x12x12xf32> to vector<12x12xf32>
    %164 = vector.shape_cast %161 : vector<12x12xf32> to vector<1x12x12xf32>
    tpu.vector_store %arg4[%c3_71, %c0_72, %c0_73], %164 {strides = array<i32>} : memref<8x12x12xf32, #tpu.memory_space<vmem>>, vector<1x12x12xf32>,
    %c4_i32_74 = arith.constant 4 : i32
    %165 = arith.addi %0, %c4_i32_74 : i32
    %c4_i32_75 = arith.constant 4 : i32
    %166 = arith.muli %165, %c4_i32_75 : i32
    %c0_i32_76 = arith.constant 0 : i32
    %167 = arith.addi %166, %c0_i32_76 : i32
    %168 = arith.index_cast %167 : i32 to index
    %169 = memref.load %arg1[%168] : memref<32xf32, #tpu.memory_space<smem>>
    %c1_i32_77 = arith.constant 1 : i32
    %170 = arith.addi %166, %c1_i32_77 : i32
    %171 = arith.index_cast %170 : i32 to index
    %172 = memref.load %arg1[%171] : memref<32xf32, #tpu.memory_space<smem>>
    %c2_i32_78 = arith.constant 2 : i32
    %173 = arith.addi %166, %c2_i32_78 : i32
    %174 = arith.index_cast %173 : i32 to index
    %175 = memref.load %arg1[%174] : memref<32xf32, #tpu.memory_space<smem>>
    %c3_i32_79 = arith.constant 3 : i32
    %176 = arith.addi %166, %c3_i32_79 : i32
    %177 = arith.index_cast %176 : i32 to index
    %178 = memref.load %arg1[%177] : memref<32xf32, #tpu.memory_space<smem>>
    %c4 = arith.constant 4 : index
    %c0_80 = arith.constant 0 : index
    %c0_81 = arith.constant 0 : index
    %179 = vector.load %arg3[%c4, %c0_80, %c0_81] : memref<8x4x128xf32, #tpu.memory_space<vmem>>, vector<1x4x128xf32>
    %180 = vector.shape_cast %179 : vector<1x4x128xf32> to vector<4x128xf32>
    %c4_82 = arith.constant 4 : index
    %c0_83 = arith.constant 0 : index
    %c0_84 = arith.constant 0 : index
    %181 = vector.load %arg2[%c4_82, %c0_83, %c0_84] : memref<8x2x128xf32, #tpu.memory_space<vmem>>, vector<1x1x128xf32>
    %182 = vector.shape_cast %181 : vector<1x1x128xf32> to vector<1x128xf32>
    %c4_85 = arith.constant 4 : index
    %c1_86 = arith.constant 1 : index
    %c0_87 = arith.constant 0 : index
    %183 = vector.load %arg2[%c4_85, %c1_86, %c0_87] : memref<8x2x128xf32, #tpu.memory_space<vmem>>, vector<1x1x128xf32>
    %184 = vector.shape_cast %183 : vector<1x1x128xf32> to vector<1x128xf32>
    %cst_88 = arith.constant 0.000000e+00 : f32
    %185 = vector.broadcast %cst_88 : f32 to vector<4x128xf32>
    %186 = vector.broadcast %169 : f32 to vector<4x128xf32>
    %187 = arith.mulf %180, %186 : vector<4x128xf32>
    %188 = vector.broadcast %175 : f32 to vector<1x128xf32>
    %189 = arith.subf %188, %182 : vector<1x128xf32>
    %190 = vector.broadcast %189 : vector<1x128xf32> to vector<4x128xf32>
    %191 = arith.mulf %180, %190 : vector<4x128xf32>
    %192 = tpu.concatenate %187, %185, %191 in 0 : vector<4x128xf32>, vector<4x128xf32>, vector<4x128xf32> -> vector<12x128xf32>
    %193 = vector.broadcast %172 : f32 to vector<4x128xf32>
    %194 = arith.mulf %180, %193 : vector<4x128xf32>
    %195 = vector.broadcast %178 : f32 to vector<1x128xf32>
    %196 = arith.subf %195, %184 : vector<1x128xf32>
    %197 = vector.broadcast %196 : vector<1x128xf32> to vector<4x128xf32>
    %198 = arith.mulf %180, %197 : vector<4x128xf32>
    %199 = tpu.concatenate %185, %194, %198 in 0 : vector<4x128xf32>, vector<4x128xf32>, vector<4x128xf32> -> vector<12x128xf32>
    %cst_89 = arith.constant dense<0.000000e+00> : vector<12x12xf32>
    %200 = tpu.matmul %192, %192, %cst_89 {dimension_numbers = #tpu.dot_dimension_numbers<[1], [1], [0], [0], [0, 0, 1, 0], [], []>} : vector<12x128xf32>, vector<12x128xf32>, vector<12x12xf32> -> vector<12x12xf32>
    %cst_90 = arith.constant dense<0.000000e+00> : vector<12x12xf32>
    %201 = tpu.matmul %199, %199, %cst_90 {dimension_numbers = #tpu.dot_dimension_numbers<[1], [1], [0], [0], [0, 0, 1, 0], [], []>} : vector<12x128xf32>, vector<12x128xf32>, vector<12x12xf32> -> vector<12x12xf32>
    %202 = arith.addf %200, %201 : vector<12x12xf32>
    %c4_91 = arith.constant 4 : index
    %c0_92 = arith.constant 0 : index
    %c0_93 = arith.constant 0 : index
    %203 = vector.load %arg4[%c4_91, %c0_92, %c0_93] : memref<8x12x12xf32, #tpu.memory_space<vmem>>, vector<1x12x12xf32>
    %204 = vector.shape_cast %203 : vector<1x12x12xf32> to vector<12x12xf32>
    %205 = vector.shape_cast %202 : vector<12x12xf32> to vector<1x12x12xf32>
    tpu.vector_store %arg4[%c4_91, %c0_92, %c0_93], %205 {strides = array<i32>} : memref<8x12x12xf32, #tpu.memory_space<vmem>>, vector<1x12x12xf32>,
    %c5_i32 = arith.constant 5 : i32
    %206 = arith.addi %0, %c5_i32 : i32
    %c4_i32_94 = arith.constant 4 : i32
    %207 = arith.muli %206, %c4_i32_94 : i32
    %c0_i32_95 = arith.constant 0 : i32
    %208 = arith.addi %207, %c0_i32_95 : i32
    %209 = arith.index_cast %208 : i32 to index
    %210 = memref.load %arg1[%209] : memref<32xf32, #tpu.memory_space<smem>>
    %c1_i32_96 = arith.constant 1 : i32
    %211 = arith.addi %207, %c1_i32_96 : i32
    %212 = arith.index_cast %211 : i32 to index
    %213 = memref.load %arg1[%212] : memref<32xf32, #tpu.memory_space<smem>>
    %c2_i32_97 = arith.constant 2 : i32
    %214 = arith.addi %207, %c2_i32_97 : i32
    %215 = arith.index_cast %214 : i32 to index
    %216 = memref.load %arg1[%215] : memref<32xf32, #tpu.memory_space<smem>>
    %c3_i32_98 = arith.constant 3 : i32
    %217 = arith.addi %207, %c3_i32_98 : i32
    %218 = arith.index_cast %217 : i32 to index
    %219 = memref.load %arg1[%218] : memref<32xf32, #tpu.memory_space<smem>>
    %c5 = arith.constant 5 : index
    %c0_99 = arith.constant 0 : index
    %c0_100 = arith.constant 0 : index
    %220 = vector.load %arg3[%c5, %c0_99, %c0_100] : memref<8x4x128xf32, #tpu.memory_space<vmem>>, vector<1x4x128xf32>
    %221 = vector.shape_cast %220 : vector<1x4x128xf32> to vector<4x128xf32>
    %c5_101 = arith.constant 5 : index
    %c0_102 = arith.constant 0 : index
    %c0_103 = arith.constant 0 : index
    %222 = vector.load %arg2[%c5_101, %c0_102, %c0_103] : memref<8x2x128xf32, #tpu.memory_space<vmem>>, vector<1x1x128xf32>
    %223 = vector.shape_cast %222 : vector<1x1x128xf32> to vector<1x128xf32>
    %c5_104 = arith.constant 5 : index
    %c1_105 = arith.constant 1 : index
    %c0_106 = arith.constant 0 : index
    %224 = vector.load %arg2[%c5_104, %c1_105, %c0_106] : memref<8x2x128xf32, #tpu.memory_space<vmem>>, vector<1x1x128xf32>
    %225 = vector.shape_cast %224 : vector<1x1x128xf32> to vector<1x128xf32>
    %cst_107 = arith.constant 0.000000e+00 : f32
    %226 = vector.broadcast %cst_107 : f32 to vector<4x128xf32>
    %227 = vector.broadcast %210 : f32 to vector<4x128xf32>
    %228 = arith.mulf %221, %227 : vector<4x128xf32>
    %229 = vector.broadcast %216 : f32 to vector<1x128xf32>
    %230 = arith.subf %229, %223 : vector<1x128xf32>
    %231 = vector.broadcast %230 : vector<1x128xf32> to vector<4x128xf32>
    %232 = arith.mulf %221, %231 : vector<4x128xf32>
    %233 = tpu.concatenate %228, %226, %232 in 0 : vector<4x128xf32>, vector<4x128xf32>, vector<4x128xf32> -> vector<12x128xf32>
    %234 = vector.broadcast %213 : f32 to vector<4x128xf32>
    %235 = arith.mulf %221, %234 : vector<4x128xf32>
    %236 = vector.broadcast %219 : f32 to vector<1x128xf32>
    %237 = arith.subf %236, %225 : vector<1x128xf32>
    %238 = vector.broadcast %237 : vector<1x128xf32> to vector<4x128xf32>
    %239 = arith.mulf %221, %238 : vector<4x128xf32>
    %240 = tpu.concatenate %226, %235, %239 in 0 : vector<4x128xf32>, vector<4x128xf32>, vector<4x128xf32> -> vector<12x128xf32>
    %cst_108 = arith.constant dense<0.000000e+00> : vector<12x12xf32>
    %241 = tpu.matmul %233, %233, %cst_108 {dimension_numbers = #tpu.dot_dimension_numbers<[1], [1], [0], [0], [0, 0, 1, 0], [], []>} : vector<12x128xf32>, vector<12x128xf32>, vector<12x12xf32> -> vector<12x12xf32>
    %cst_109 = arith.constant dense<0.000000e+00> : vector<12x12xf32>
    %242 = tpu.matmul %240, %240, %cst_109 {dimension_numbers = #tpu.dot_dimension_numbers<[1], [1], [0], [0], [0, 0, 1, 0], [], []>} : vector<12x128xf32>, vector<12x128xf32>, vector<12x12xf32> -> vector<12x12xf32>
    %243 = arith.addf %241, %242 : vector<12x12xf32>
    %c5_110 = arith.constant 5 : index
    %c0_111 = arith.constant 0 : index
    %c0_112 = arith.constant 0 : index
    %244 = vector.load %arg4[%c5_110, %c0_111, %c0_112] : memref<8x12x12xf32, #tpu.memory_space<vmem>>, vector<1x12x12xf32>
    %245 = vector.shape_cast %244 : vector<1x12x12xf32> to vector<12x12xf32>
    %246 = vector.shape_cast %243 : vector<12x12xf32> to vector<1x12x12xf32>
    tpu.vector_store %arg4[%c5_110, %c0_111, %c0_112], %246 {strides = array<i32>} : memref<8x12x12xf32, #tpu.memory_space<vmem>>, vector<1x12x12xf32>,
    %c6_i32 = arith.constant 6 : i32
    %247 = arith.addi %0, %c6_i32 : i32
    %c4_i32_113 = arith.constant 4 : i32
    %248 = arith.muli %247, %c4_i32_113 : i32
    %c0_i32_114 = arith.constant 0 : i32
    %249 = arith.addi %248, %c0_i32_114 : i32
    %250 = arith.index_cast %249 : i32 to index
    %251 = memref.load %arg1[%250] : memref<32xf32, #tpu.memory_space<smem>>
    %c1_i32_115 = arith.constant 1 : i32
    %252 = arith.addi %248, %c1_i32_115 : i32
    %253 = arith.index_cast %252 : i32 to index
    %254 = memref.load %arg1[%253] : memref<32xf32, #tpu.memory_space<smem>>
    %c2_i32_116 = arith.constant 2 : i32
    %255 = arith.addi %248, %c2_i32_116 : i32
    %256 = arith.index_cast %255 : i32 to index
    %257 = memref.load %arg1[%256] : memref<32xf32, #tpu.memory_space<smem>>
    %c3_i32_117 = arith.constant 3 : i32
    %258 = arith.addi %248, %c3_i32_117 : i32
    %259 = arith.index_cast %258 : i32 to index
    %260 = memref.load %arg1[%259] : memref<32xf32, #tpu.memory_space<smem>>
    %c6 = arith.constant 6 : index
    %c0_118 = arith.constant 0 : index
    %c0_119 = arith.constant 0 : index
    %261 = vector.load %arg3[%c6, %c0_118, %c0_119] : memref<8x4x128xf32, #tpu.memory_space<vmem>>, vector<1x4x128xf32>
    %262 = vector.shape_cast %261 : vector<1x4x128xf32> to vector<4x128xf32>
    %c6_120 = arith.constant 6 : index
    %c0_121 = arith.constant 0 : index
    %c0_122 = arith.constant 0 : index
    %263 = vector.load %arg2[%c6_120, %c0_121, %c0_122] : memref<8x2x128xf32, #tpu.memory_space<vmem>>, vector<1x1x128xf32>
    %264 = vector.shape_cast %263 : vector<1x1x128xf32> to vector<1x128xf32>
    %c6_123 = arith.constant 6 : index
    %c1_124 = arith.constant 1 : index
    %c0_125 = arith.constant 0 : index
    %265 = vector.load %arg2[%c6_123, %c1_124, %c0_125] : memref<8x2x128xf32, #tpu.memory_space<vmem>>, vector<1x1x128xf32>
    %266 = vector.shape_cast %265 : vector<1x1x128xf32> to vector<1x128xf32>
    %cst_126 = arith.constant 0.000000e+00 : f32
    %267 = vector.broadcast %cst_126 : f32 to vector<4x128xf32>
    %268 = vector.broadcast %251 : f32 to vector<4x128xf32>
    %269 = arith.mulf %262, %268 : vector<4x128xf32>
    %270 = vector.broadcast %257 : f32 to vector<1x128xf32>
    %271 = arith.subf %270, %264 : vector<1x128xf32>
    %272 = vector.broadcast %271 : vector<1x128xf32> to vector<4x128xf32>
    %273 = arith.mulf %262, %272 : vector<4x128xf32>
    %274 = tpu.concatenate %269, %267, %273 in 0 : vector<4x128xf32>, vector<4x128xf32>, vector<4x128xf32> -> vector<12x128xf32>
    %275 = vector.broadcast %254 : f32 to vector<4x128xf32>
    %276 = arith.mulf %262, %275 : vector<4x128xf32>
    %277 = vector.broadcast %260 : f32 to vector<1x128xf32>
    %278 = arith.subf %277, %266 : vector<1x128xf32>
    %279 = vector.broadcast %278 : vector<1x128xf32> to vector<4x128xf32>
    %280 = arith.mulf %262, %279 : vector<4x128xf32>
    %281 = tpu.concatenate %267, %276, %280 in 0 : vector<4x128xf32>, vector<4x128xf32>, vector<4x128xf32> -> vector<12x128xf32>
    %cst_127 = arith.constant dense<0.000000e+00> : vector<12x12xf32>
    %282 = tpu.matmul %274, %274, %cst_127 {dimension_numbers = #tpu.dot_dimension_numbers<[1], [1], [0], [0], [0, 0, 1, 0], [], []>} : vector<12x128xf32>, vector<12x128xf32>, vector<12x12xf32> -> vector<12x12xf32>
    %cst_128 = arith.constant dense<0.000000e+00> : vector<12x12xf32>
    %283 = tpu.matmul %281, %281, %cst_128 {dimension_numbers = #tpu.dot_dimension_numbers<[1], [1], [0], [0], [0, 0, 1, 0], [], []>} : vector<12x128xf32>, vector<12x128xf32>, vector<12x12xf32> -> vector<12x12xf32>
    %284 = arith.addf %282, %283 : vector<12x12xf32>
    %c6_129 = arith.constant 6 : index
    %c0_130 = arith.constant 0 : index
    %c0_131 = arith.constant 0 : index
    %285 = vector.load %arg4[%c6_129, %c0_130, %c0_131] : memref<8x12x12xf32, #tpu.memory_space<vmem>>, vector<1x12x12xf32>
    %286 = vector.shape_cast %285 : vector<1x12x12xf32> to vector<12x12xf32>
    %287 = vector.shape_cast %284 : vector<12x12xf32> to vector<1x12x12xf32>
    tpu.vector_store %arg4[%c6_129, %c0_130, %c0_131], %287 {strides = array<i32>} : memref<8x12x12xf32, #tpu.memory_space<vmem>>, vector<1x12x12xf32>,
    %c7_i32 = arith.constant 7 : i32
    %288 = arith.addi %0, %c7_i32 : i32
    %c4_i32_132 = arith.constant 4 : i32
    %289 = arith.muli %288, %c4_i32_132 : i32
    %c0_i32_133 = arith.constant 0 : i32
    %290 = arith.addi %289, %c0_i32_133 : i32
    %291 = arith.index_cast %290 : i32 to index
    %292 = memref.load %arg1[%291] : memref<32xf32, #tpu.memory_space<smem>>
    %c1_i32_134 = arith.constant 1 : i32
    %293 = arith.addi %289, %c1_i32_134 : i32
    %294 = arith.index_cast %293 : i32 to index
    %295 = memref.load %arg1[%294] : memref<32xf32, #tpu.memory_space<smem>>
    %c2_i32_135 = arith.constant 2 : i32
    %296 = arith.addi %289, %c2_i32_135 : i32
    %297 = arith.index_cast %296 : i32 to index
    %298 = memref.load %arg1[%297] : memref<32xf32, #tpu.memory_space<smem>>
    %c3_i32_136 = arith.constant 3 : i32
    %299 = arith.addi %289, %c3_i32_136 : i32
    %300 = arith.index_cast %299 : i32 to index
    %301 = memref.load %arg1[%300] : memref<32xf32, #tpu.memory_space<smem>>
    %c7 = arith.constant 7 : index
    %c0_137 = arith.constant 0 : index
    %c0_138 = arith.constant 0 : index
    %302 = vector.load %arg3[%c7, %c0_137, %c0_138] : memref<8x4x128xf32, #tpu.memory_space<vmem>>, vector<1x4x128xf32>
    %303 = vector.shape_cast %302 : vector<1x4x128xf32> to vector<4x128xf32>
    %c7_139 = arith.constant 7 : index
    %c0_140 = arith.constant 0 : index
    %c0_141 = arith.constant 0 : index
    %304 = vector.load %arg2[%c7_139, %c0_140, %c0_141] : memref<8x2x128xf32, #tpu.memory_space<vmem>>, vector<1x1x128xf32>
    %305 = vector.shape_cast %304 : vector<1x1x128xf32> to vector<1x128xf32>
    %c7_142 = arith.constant 7 : index
    %c1_143 = arith.constant 1 : index
    %c0_144 = arith.constant 0 : index
    %306 = vector.load %arg2[%c7_142, %c1_143, %c0_144] : memref<8x2x128xf32, #tpu.memory_space<vmem>>, vector<1x1x128xf32>
    %307 = vector.shape_cast %306 : vector<1x1x128xf32> to vector<1x128xf32>
    %cst_145 = arith.constant 0.000000e+00 : f32
    %308 = vector.broadcast %cst_145 : f32 to vector<4x128xf32>
    %309 = vector.broadcast %292 : f32 to vector<4x128xf32>
    %310 = arith.mulf %303, %309 : vector<4x128xf32>
    %311 = vector.broadcast %298 : f32 to vector<1x128xf32>
    %312 = arith.subf %311, %305 : vector<1x128xf32>
    %313 = vector.broadcast %312 : vector<1x128xf32> to vector<4x128xf32>
    %314 = arith.mulf %303, %313 : vector<4x128xf32>
    %315 = tpu.concatenate %310, %308, %314 in 0 : vector<4x128xf32>, vector<4x128xf32>, vector<4x128xf32> -> vector<12x128xf32>
    %316 = vector.broadcast %295 : f32 to vector<4x128xf32>
    %317 = arith.mulf %303, %316 : vector<4x128xf32>
    %318 = vector.broadcast %301 : f32 to vector<1x128xf32>
    %319 = arith.subf %318, %307 : vector<1x128xf32>
    %320 = vector.broadcast %319 : vector<1x128xf32> to vector<4x128xf32>
    %321 = arith.mulf %303, %320 : vector<4x128xf32>
    %322 = tpu.concatenate %308, %317, %321 in 0 : vector<4x128xf32>, vector<4x128xf32>, vector<4x128xf32> -> vector<12x128xf32>
    %cst_146 = arith.constant dense<0.000000e+00> : vector<12x12xf32>
    %323 = tpu.matmul %315, %315, %cst_146 {dimension_numbers = #tpu.dot_dimension_numbers<[1], [1], [0], [0], [0, 0, 1, 0], [], []>} : vector<12x128xf32>, vector<12x128xf32>, vector<12x12xf32> -> vector<12x12xf32>
    %cst_147 = arith.constant dense<0.000000e+00> : vector<12x12xf32>
    %324 = tpu.matmul %322, %322, %cst_147 {dimension_numbers = #tpu.dot_dimension_numbers<[1], [1], [0], [0], [0, 0, 1, 0], [], []>} : vector<12x128xf32>, vector<12x128xf32>, vector<12x12xf32> -> vector<12x12xf32>
    %325 = arith.addf %323, %324 : vector<12x12xf32>
    %c7_148 = arith.constant 7 : index
    %c0_149 = arith.constant 0 : index
    %c0_150 = arith.constant 0 : index
    %326 = vector.load %arg4[%c7_148, %c0_149, %c0_150] : memref<8x12x12xf32, #tpu.memory_space<vmem>>, vector<1x12x12xf32>
    %327 = vector.shape_cast %326 : vector<1x12x12xf32> to vector<12x12xf32>
    %328 = vector.shape_cast %325 : vector<12x12xf32> to vector<1x12x12xf32>
    tpu.vector_store %arg4[%c7_148, %c0_149, %c0_150], %328 {strides = array<i32>} : memref<8x12x12xf32, #tpu.memory_space<vmem>>, vector<1x12x12xf32>,
    return
  }
  func.func @transform_0(%arg0: i32) -> i32 {
    %c0_i32 = arith.constant 0 : i32
    %c0_i32_0 = arith.constant 0 : i32
    return %c0_i32 : i32
  }
  func.func @transform_1(%arg0: i32) -> (i32, i32, i32) {
    %c0_i32 = arith.constant 0 : i32
    %c0_i32_0 = arith.constant 0 : i32
    %c0_i32_1 = arith.constant 0 : i32
    return %arg0, %c0_i32, %c0_i32_0 : i32, i32, i32
  }
  func.func @transform_2(%arg0: i32) -> (i32, i32, i32) {
    %c0_i32 = arith.constant 0 : i32
    %c0_i32_0 = arith.constant 0 : i32
    %c0_i32_1 = arith.constant 0 : i32
    return %arg0, %c0_i32, %c0_i32_0 : i32, i32, i32
  }
  func.func @transform_3(%arg0: i32) -> (i32, i32, i32) {
    %c0_i32 = arith.constant 0 : i32
    %c0_i32_0 = arith.constant 0 : i32
    %c0_i32_1 = arith.constant 0 : i32
    return %arg0, %c0_i32, %c0_i32_0 : i32, i32, i32
  }
}

</mosaic_0001>

<bundles_post_ra>
// kernel: tpu_custom_call.1
= control target key start
LH: loop header
LB: loop body
LE: loop exit
PB: predicated region body
PF: predicated region fallthrough
CT: control target
= control target key end

     0   :  { %8 = vsyncpa [#allocation4], 0  ;;  %s2436_s0 = inlined_call_operand.hbm [shape: f32[32], index: 0, kind: input, shape index: {}]   ;;  %s2437_s1 = inlined_call_operand.hbm [shape: f32[8,2,128], index: 1, kind: input, shape index: {}]   ;;  %s2438_s2 = inlined_call_operand.hbm [shape: f32[8,4,128], index: 2, kind: input, shape index: {}]   ;;  %s2439_s3 = inlined_call_operand.vmem [shape: f32[8,12,12], index: 3, kind: output, shape index: {}]  }
   0x1   :  { %9 = vsyncpa [#allocation3], 0 }
   0x2   :  { %10 = vsyncpa [#allocation7], 0  ;;  %s1969_s14 = scalar_lea.hbm %s2436_s0, 16 }
   0x3   :  { %p1970_p0 = scmp.ne.s32.totalorder %s2436_s0, %s1969_s14  ;;  %p1973_p1 = scmp.lt.u32.totalorder %s1969_s14, %s2436_s0 }
   0x5   :  { %p1975_p2 = pnand %p1973_p1, %p1970_p0 }
   0x7   :  { %1978 = shalt.err (!%p1975_p2)
}
   0x8   :  { %s2029_s19 = smov [#allocation2]   ;;  %s2030_s22 = smov [#allocation5]  }
   0x9   :  { %18 = dma.hbm_to_smem %s2436_s0, 16, %s2029_s19, [#allocation4]  }
   0xa   :  { %s24_s23 = sshll.u32 %s2030_s22, 4  ;;  %s1979_s26 = scalar_lea.hbm %s2437_s1, 256  ;;  %s25_s23 = int_to_ptr.vmem [resolvable:$true] %s24_s23 }
   0xb   :  { %p1980_p3 = scmp.ne.s32.totalorder %s2437_s1, %s1979_s26  ;;  %p1983_p4 = scmp.lt.u32.totalorder %s1979_s26, %s2437_s1 }
   0xd   :  { %p1985_p5 = pnand %p1983_p4, %p1980_p3 }
   0xf   :  { %1988 = shalt.err (!%p1985_p5)
}
  0x10   :  { %s1989_s4 = scalar_lea.vmem %s25_s23, 256  ;;  %p1994_p7 = scmp.lt.s32.totalorder %s25_s23, %s25_s23 }
  0x11   :  { %p1990_p6 = scmp.ne.s32.totalorder %s25_s23, %s1989_s4  ;;  %p1995_p8 = scmp.lt.s32.totalorder %s1989_s4, %s1989_s4 }
  0x13   :  { %p1996_p9 = por %p1995_p8, %p1994_p7 }
  0x15   :  { %p1997_p10 = pnand %p1996_p9, %p1990_p6 }
  0x17   :  { %2000 = shalt.err (!%p1997_p10)
}
  0x18   :  { %s2031_s0 = smov 32   ;;  %s2032_s5 = smov 2  }
  0x19   :  { %30 = dma.hbm_to_vmem [thread:$0]  %s2437_s1, 256, %s25_s23, [#allocation3], %s2031_s0, %s2031_s0, %s2032_s5  }
  0x1a   :  { %s2033_s8 = smov [#allocation6]   ;;  %s2001_s12 = scalar_lea.hbm %s2438_s2, 512 }
  0x1b   :  { %s36_s9 = sshll.u32 %s2033_s8, 4  ;;  %p2002_p11 = scmp.ne.s32.totalorder %s2438_s2, %s2001_s12  ;;  %s37_s9 = int_to_ptr.vmem [resolvable:$true] %s36_s9 }
  0x1c   :  { %p2005_p12 = scmp.lt.u32.totalorder %s2001_s12, %s2438_s2 }
  0x1e   :  { %p2007_p13 = pnand %p2005_p12, %p2002_p11 }
  0x20   :  { %2010 = shalt.err (!%p2007_p13)
}
  0x21   :  { %s2011_s17 = scalar_lea.vmem %s37_s9, 512  ;;  %p2016_p1 = scmp.lt.s32.totalorder %s37_s9, %s37_s9 }
  0x22   :  { %p2012_p0 = scmp.ne.s32.totalorder %s37_s9, %s2011_s17  ;;  %p2017_p2 = scmp.lt.s32.totalorder %s2011_s17, %s2011_s17 }
  0x24   :  { %p2018_p3 = por %p2017_p2, %p2016_p1 }
  0x26   :  { %p2019_p4 = pnand %p2018_p3, %p2012_p0 }
  0x28   :  { %2022 = shalt.err (!%p2019_p4)
}
  0x29   :  { %s2034_s1 = smov 64   ;;  %s2035_s18 = smov 4  }
  0x2a   :  { %42 = dma.hbm_to_vmem [thread:$0]  %s2438_s2, 512, %s37_s9, [#allocation7], %s2034_s1, %s2034_s1, %s2035_s18  }
  0x2b   :  { %2023 = dma.done.wait [#allocation4], 16  }
  0x2c   :  { %2024 = vsyncadd [#allocation4], 4294967280 }
  0x2d   :  { %2025 = dma.done.wait [#allocation3], 256  }
  0x2e   :  { %2026 = vsyncadd [#allocation3], 4294967040 }
  0x2f   :  { %2027 = dma.done.wait [#allocation7], 512  }
  0x30   :  { %2028 = vsyncadd [#allocation7], 4294966784 }
  0x31   :  { %52 = sfence }
  0x32   :  { %s1580_s21 = sld [smem:[#allocation2 + $0x1]]  ;;  %s1582_s22 = sld [smem:[#allocation2 + $0x3]]  ;;  %v69_v0 = vlaneseq  ;;  %v62_v2 = vld [vmem:[#allocation6] sm:$0xf]  ;;  %v64_v3 = vld [vmem:[#allocation5 + $0x1] sm:$0x1] }
  0x33   :  { %s1590_s23 = sld [smem:[#allocation2 + $0x5]]  ;;  %s1592_s24 = sld [smem:[#allocation2 + $0x7]]  ;;  %v2097_v4 = vld [vmem:[#allocation6 + $0x4] sm:$0xf]  ;;  %vm74_vm0 = vcmask 1043456   ;;  %vm2036_vm2 = vmmov 1  }
  0x34   :  { %v70_v1 = vshrl.u32 %v69_v0, 7  ;;  %s2093_s25 = sld [smem:[#allocation2]]  ;;  %s2095_s26 = sld [smem:[#allocation2 + $0x2]]  ;;  %v256_v8 = vld [vmem:[#allocation5 + $0x3] sm:$0x1]  ;;  %vm2116_vm1 = vmneg %vm74_vm0  ;;  %vm241_vm5 = vcmask 93184  }
  0x35   :  { %s2099_s2 = sld [smem:[#allocation2 + $0x4]]  ;;  %s2103_s27 = sld [smem:[#allocation2 + $0x6]]  ;;  %v63_v14 = vld [vmem:[#allocation5] sm:$0x1]  ;;  %v255_v22 = vld [vmem:[#allocation5 + $0x2] sm:$0x1]  ;;  %vm2139_vm3 = vmpackc.low %vm2036_vm2, %vm2116_vm1 }
  0x36   :  { %v2101_v5 = vsub.s32 0, %v70_v1  ;;  %s2105_s28 = sld [smem:[#allocation2 + $0x9]]  ;;  %s2107_s29 = sld [smem:[#allocation2 + $0xb]]  ;;  %v2132_v28 = vld [vmem:[#allocation6 + $0x8] sm:$0xf]  ;;  %vm2177_vm4 = vmpackc.low %vm2036_vm2, %vm74_vm0  ;;  %vm239_vm6 = vcmask 97280  }
  0x37   :  { %s2109_s30 = sld [smem:[#allocation2 + $0xd]]  ;;  %s2111_s4 = sld [smem:[#allocation2 + $0xf]]  ;;  %v446_v29 = vld [vmem:[#allocation5 + $0x5] sm:$0x1]  ;;  %v2151_v35 = vld [vmem:[#allocation6 + $0xc] sm:$0xf] }
  0x38   :  { %v76_v6 = vstv %s1580_s21  ;;  %v78_v7 = vstv %s1582_s22  ;;  %s2123_s0 = sld [smem:[#allocation2 + $0xa]]  ;;  %s2134_s5 = sld [smem:[#allocation2 + $0xe]]  ;;  %v636_v40 = vld [vmem:[#allocation5 + $0x7] sm:$0x1]  ;;  %v445_v52 = vld [vmem:[#allocation5 + $0x4] sm:$0x1] }
  0x39   :  { %v77_v9 = vmul.f32 %v76_v6, %v62_v2  ;;  %v79_v10 = vsub.f32 %v78_v7, %v64_v3  ;;  %v267_v11 = vstv %s1590_s23  ;;  %v269_v13 = vstv %s1592_s24  ;;  %s2161_s6 = sld [smem:[#allocation2 + $0x8]]  ;;  %s2163_s7 = sld [smem:[#allocation2 + $0x13]]  ;;  %v635_v56 = vld [vmem:[#allocation5 + $0x6] sm:$0x1]  ;;  %v826_v6 = vld [vmem:[#allocation5 + $0x9] sm:$0x1] }
  0x3a   :  { %v268_v12 = vmul.f32 %v267_v11, %v2097_v4  ;;  %v270_v18 = vsub.f32 %v269_v13, %v256_v8  ;;  %v65_v19 = vstv %s2093_s25  ;;  %v67_v21 = vstv %s2095_s26  ;;  %s2182_s8 = sld [smem:[#allocation2 + $0xc]]  ;;  %s2184_s9 = sld [smem:[#allocation2 + $0x17]]  ;;  %v1016_v11 = vld [vmem:[#allocation5 + $0xb] sm:$0x1] }
  0x3b   :  { %v83_v15 = vrot.slane %v79_v10, %v2101_v5  ;;  %v86_v16 = vrot.slane %v77_v9, 4  ;;  %v257_v23 = vstv %s2099_s2  ;;  %v2130_v26 = vmul.f32 %v65_v19, %v62_v2  ;;  %s2201_s10 = sld [smem:[#allocation2 + $0x11]]  ;;  %s2212_s11 = sld [smem:[#allocation2 + $0x15]] }
  0x3c   :  { %v277_v20 = vrot.slane %v268_v12, 4  ;;  %v274_v25 = vrot.slane %v270_v18, %v2101_v5  ;;  %v68_v27 = vsub.f32 %v67_v21, %v63_v14  ;;  %v2146_v31 = vmul.f32 %v257_v23, %v2097_v4  ;;  %s2220_s12 = sld [smem:[#allocation2 + $0x12]]  ;;  %s2231_s13 = sld [smem:[#allocation2 + $0x16]] }
  0x3d   :  { %v2125_v24 = vmul.f32 %v83_v15, %v62_v2  ;;  %1741 = vmatprep.mubr.msk.f32.mxu0 %vm2116_vm1, %v86_v16  ;;  %v259_v32 = vstv %s2103_s27  ;;  %v457_v33 = vstv %s2105_s28  ;;  %v459_v34 = vstv %s2107_s29  ;;  %s2255_s14 = sld [smem:[#allocation2 + $0x10]]  ;;  %s2258_s15 = sld [smem:[#allocation2 + $0x1b]] }
  0x3e   :  { %1755 = vmatprep.mubr.msk.f32.mxu1 %vm2116_vm1, %v277_v20  ;;  %v275_v37 = vmul.f32 %v274_v25, %v2097_v4  ;;  %v72_v38 = vrot.slane %v68_v27, %v2101_v5  ;;  %v260_v39 = vsub.f32 %v259_v32, %v255_v22  ;;  %v2157_v41 = vmul.f32 %v457_v33, %v2132_v28  ;;  %v1013_v22 = vld [vmem:[#allocation6 + $0x14] sm:$0xf]  ;;  %v825_v27 = vld [vmem:[#allocation5 + $0x8] sm:$0x1]  ;;  %s2269_s16 = sld [smem:[#allocation2 + $0x14]]  ;;  %s2272_s17 = sld [smem:[#allocation2 + $0x1f]] }
  0x3f   :  { %v1849_v36 = vpack.c.bf16 %v2125_v24, %v86_v16  ;;  %v460_v42 = vsub.f32 %v459_v34, %v446_v29  ;;  %v647_v43 = vstv %s2109_s30  ;;  %v649_v44 = vstv %s2111_s4  ;;  %v823_v16 = vld [vmem:[#allocation6 + $0x10] sm:$0xf]  ;;  %v1015_v33 = vld [vmem:[#allocation5 + $0xa] sm:$0x1]  ;;  %s2284_s1 = sld [smem:[#allocation2 + $0x19]]  ;;  %s2291_s18 = sld [smem:[#allocation2 + $0x1d]] }
  0x40   :  { %v1861_v45 = vpack.c.bf16 %v275_v37, %v277_v20  ;;  %v2167_v46 = vmul.f32 %v72_v38, %v62_v2  ;;  %v264_v47 = vrot.slane %v260_v39, %v2101_v5  ;;  %v2171_v48 = vmul.f32 %v647_v43, %v2151_v35  ;;  %s2297_s19 = sld [smem:[#allocation2 + $0x1a]]  ;;  %s2307_s20 = sld [smem:[#allocation2 + $0x1e]] }
  0x41   :  { %1851 = vmatprep.subr.msk.bf16.mxu0 %vm2139_vm3, %v1849_v36  ;;  %v464_v50 = vrot.slane %v460_v42, %v2101_v5  ;;  %v650_v51 = vsub.f32 %v649_v44, %v636_v40  ;;  %v467_v55 = vrot.slane %v2157_v41, 4  ;;  %v449_v59 = vstv %s2123_s0  ;;  %v1206_v44 = vld [vmem:[#allocation5 + $0xd] sm:$0x1]  ;;  %s2320_s21 = sld [smem:[#allocation2 + $0x18]]  ;;  %s1661_s22 = sld [smem:[#allocation2 + $0x1c]] }
  0x42   :  { %1854 = vmatpush3.bf16.xpose.msk.msra.mxu0 %vm2139_vm3, %v1849_v36  ;;  %1863 = vmatprep.subr.msk.bf16.mxu1 %vm2139_vm3, %v1861_v45  ;;  %v1855_v53 = vpack.c.bf16 %v2167_v46, %v2130_v26  ;;  %v2191_v54 = vmul.f32 %v264_v47, %v2097_v4  ;;  %v657_v61 = vrot.slane %v2171_v48, 4  ;;  %v450_v62 = vsub.f32 %v449_v59, %v445_v52 }
  0x43   :  { %1866 = vmatpush3.bf16.xpose.msk.msra.mxu1 %vm2139_vm3, %v1861_v45  ;;  %v2197_v57 = vmul.f32 %v464_v50, %v2132_v28  ;;  %v654_v58 = vrot.slane %v650_v51, %v2101_v5  ;;  %v639_v63 = vstv %s2134_s5  ;;  %v447_v4 = vstv %s2161_s6  ;;  %v1396_v50 = vld [vmem:[#allocation5 + $0xf] sm:$0x1] }
  0x44   :  { %1857 = vmatprep.subr.msk.bf16.mxu0 %vm2177_vm4, %v1855_v53  ;;  %v1867_v60 = vpack.c.bf16 %v2191_v54, %v2146_v31  ;;  %v640_v1 = vsub.f32 %v639_v63, %v635_v56  ;;  %v454_v3 = vrot.slane %v450_v62, %v2101_v5  ;;  %v839_v7 = vstv %s2163_s7 }
  0x45   :  { %v2210_v0 = vmul.f32 %v654_v58, %v2151_v35  ;;  %v1873_v2 = vpack.c.bf16 %v2197_v57, %v467_v55  ;;  %v637_v10 = vstv %s2182_s8  ;;  %v1029_v12 = vstv %s2184_s9 }
  0x46   :  { %1869 = vmatprep.subr.msk.bf16.mxu1 %vm2177_vm4, %v1867_v60  ;;  %v644_v9 = vrot.slane %v640_v1, %v2101_v5  ;;  %v448_v13 = vmul.f32 %v447_v4, %v2132_v28  ;;  %v2237_v14 = vmul.f32 %v454_v3, %v2132_v28  ;;  %v840_v15 = vsub.f32 %v839_v7, %v826_v6  ;;  %v1205_v1 = vld [vmem:[#allocation5 + $0xc] sm:$0x1]  ;;  %v1395_v7 = vld [vmem:[#allocation5 + $0xe] sm:$0x1] }
  0x47   :  { %v1885_v8 = vpack.c.bf16 %v2210_v0, %v657_v61  ;;  %v837_v18 = vstv %s2201_s10  ;;  %v638_v19 = vmul.f32 %v637_v10, %v2151_v35  ;;  %v1030_v21 = vsub.f32 %v1029_v12, %v1016_v11 }
  0x48   :  { %v2248_v20 = vmul.f32 %v644_v9, %v2151_v35  ;;  %v1027_v23 = vstv %s2212_s11  ;;  %v2252_v25 = vmul.f32 %v837_v18, %v823_v16  ;;  %v829_v28 = vstv %s2220_s12 }
  0x49   :  { %1742 = vmatmul.mubr.f32.vlgmr.msra.gmra.mrb[0].mxu0 %v2125_v24  ;;  %v1879_v24 = vpack.c.bf16 %v2237_v14, %v448_v13  ;;  %v1034_v32 = vrot.slane %v1030_v21, %v2101_v5  ;;  %v1019_v34 = vstv %s2231_s13  ;;  %v827_v43 = vstv %s2255_s14 }
  0x4a   :  { %1860 = vmatpush3.bf16.xpose.msk.msra.mxu0 %vm2177_vm4, %v1855_v53  ;;  %1748 = vmatprep.mubr.msk.f32.mxu0 %vm74_vm0, %v2130_v26  ;;  %v844_v26 = vrot.slane %v840_v15, %v2101_v5  ;;  %v1891_v29 = vpack.c.bf16 %v2248_v20, %v638_v19  ;;  %v847_v36 = vrot.slane %v2252_v25, 4  ;;  %v1020_v40 = vsub.f32 %v1019_v34, %v1015_v33 }
  0x4b   :  { %1756 = vmatmul.mubr.f32.vlgmr.msra.gmra.mrb[0].mxu1 %v275_v37  ;;  %1875 = vmatprep.subr.msk.bf16.mxu0 %vm2139_vm3, %v1873_v2  ;;  %v830_v37 = vsub.f32 %v829_v28, %v825_v27  ;;  %v2288_v38 = vmul.f32 %v1034_v32, %v1013_v22  ;;  %v1219_v45 = vstv %s2258_s15  ;;  %v1017_v48 = vstv %s2269_s16 }
  0x4c   :  { %1872 = vmatpush3.bf16.xpose.msk.msra.mxu1 %vm2177_vm4, %v1867_v60  ;;  %1762 = vmatprep.mubr.msk.f32.mxu1 %vm74_vm0, %v2146_v31  ;;  %v2262_v31 = vmul.f32 %v1027_v23, %v1013_v22  ;;  %v2277_v35 = vmul.f32 %v844_v26, %v823_v16  ;;  %v1024_v47 = vrot.slane %v1020_v40, %v2101_v5  ;;  %v1409_v51 = vstv %s2272_s17  ;;  %v1393_v60 = vld [vmem:[#allocation6 + $0x1c] sm:$0xf] }
  0x4d   :  { %1887 = vmatprep.subr.msk.bf16.mxu1 %vm2139_vm3, %v1885_v8  ;;  %v834_v42 = vrot.slane %v830_v37, %v2101_v5  ;;  %v828_v52 = vmul.f32 %v827_v43, %v823_v16  ;;  %v1217_v56 = vstv %s2284_s1  ;;  %v1410_v59 = vsub.f32 %v1409_v51, %v1396_v50 }
  0x4e   :  { %v1037_v39 = vrot.slane %v2262_v31, 4  ;;  %v1897_v41 = vpack.c.bf16 %v2277_v35, %v847_v36  ;;  %v1025_v58 = vmul.f32 %v1024_v47, %v1013_v22  ;;  %v1207_v18 = vstv %s2320_s21 }
  0x4f   :  { %v835_v53 = vmul.f32 %v834_v42, %v823_v16  ;;  %v1414_v6 = vrot.slane %v1410_v59, %v2101_v5  ;;  %v1397_v21 = vstv %s1661_s22 }
  0x51   :  { %1749 = vmatmul.mubr.f32.vlgmr.msra.gmra.mrb[0].mxu0 %v2167_v46  ;;  %v1909_v46 = vpack.c.bf16 %v2288_v38, %v1037_v39  ;;  %v1903_v62 = vpack.c.bf16 %v835_v53, %v828_v52  ;;  %v1415_v12 = vmul.f32 %v1414_v6, %v1393_v60 }
  0x52   :  { %1878 = vmatpush3.bf16.xpose.msk.msra.mxu0 %vm2139_vm3, %v1873_v2  ;;  %1769 = vmatprep.mubr.msk.f32.mxu0 %vm2116_vm1, %v467_v55  ;;  %v1203_v55 = vld [vmem:[#allocation6 + $0x18] sm:$0xf]  ;;  %v1209_v2 = vstv %s2297_s19 }
  0x53   :  { %1763 = vmatmul.mubr.f32.vlgmr.msra.gmra.mrb[0].mxu1 %v2191_v54  ;;  %1881 = vmatprep.subr.msk.bf16.mxu0 %vm2177_vm4, %v1879_v24  ;;  %v1220_v54 = vsub.f32 %v1219_v45, %v1206_v44  ;;  %v1218_v63 = vmul.f32 %v1217_v56, %v1203_v55  ;;  %v1210_v11 = vsub.f32 %v1209_v2, %v1205_v1 }
  0x54   :  { %1890 = vmatpush3.bf16.xpose.msk.msra.mxu1 %vm2139_vm3, %v1885_v8  ;;  %1783 = vmatprep.mubr.msk.f32.mxu1 %vm2116_vm1, %v657_v61  ;;  %v1407_v61 = vstv %s2291_s18  ;;  %v1399_v8 = vstv %s2307_s20 }
  0x55   :  { %1893 = vmatprep.subr.msk.bf16.mxu1 %vm2177_vm4, %v1891_v29  ;;  %v1408_v4 = vmul.f32 %v1407_v61, %v1393_v60  ;;  %v1227_v10 = vrot.slane %v1218_v63, 4  ;;  %v1214_v16 = vrot.slane %v1210_v11, %v2101_v5 }
  0x57   :  { %v1215_v23 = vmul.f32 %v1214_v16, %v1203_v55 }
  0x59   :  { %1770 = vmatmul.mubr.f32.vlgmr.msra.gmra.mrb[2].mxu0 %v2197_v57  ;;  %v1018_v57 = vmul.f32 %v1017_v48, %v1013_v22  ;;  %v1208_v22 = vmul.f32 %v1207_v18, %v1203_v55 }
  0x5a   :  { %1884 = vmatpush3.bf16.xpose.msk.msra.mxu0 %vm2177_vm4, %v1879_v24  ;;  %1776 = vmatprep.mubr.msk.f32.mxu0 %vm74_vm0, %v448_v13  ;;  %v1417_v13 = vrot.slane %v1408_v4, 4 }
  0x5b   :  { %1784 = vmatmul.mubr.f32.vlgmr.msra.gmra.mrb[2].mxu1 %v2210_v0  ;;  %1899 = vmatprep.subr.msk.bf16.mxu0 %vm2139_vm3, %v1897_v41  ;;  %v1224_v0 = vrot.slane %v1220_v54, %v2101_v5  ;;  %v1915_v3 = vpack.c.bf16 %v1025_v58, %v1018_v57  ;;  %v1927_v25 = vpack.c.bf16 %v1215_v23, %v1208_v22 }
  0x5c   :  { %1896 = vmatpush3.bf16.xpose.msk.msra.mxu1 %vm2177_vm4, %v1891_v29  ;;  %1790 = vmatprep.mubr.msk.f32.mxu1 %vm74_vm0, %v638_v19  ;;  %v1933_v19 = vpack.c.bf16 %v1415_v12, %v1417_v13 }
  0x5d   :  { %1911 = vmatprep.subr.msk.bf16.mxu1 %vm2139_vm3, %v1909_v46  ;;  %v1225_v9 = vmul.f32 %v1224_v0, %v1203_v55 }
  0x5f   :  { %v1921_v15 = vpack.c.bf16 %v1225_v9, %v1227_v10 }
  0x61   :  { %1777 = vmatmul.mubr.f32.vlgmr.msra.gmra.mrb[2].mxu0 %v2237_v14  ;;  %v1400_v14 = vsub.f32 %v1399_v8, %v1395_v7 }
  0x62   :  { %1902 = vmatpush3.bf16.xpose.msk.msra.mxu0 %vm2139_vm3, %v1897_v41  ;;  %1797 = vmatprep.mubr.msk.f32.mxu0 %vm2116_vm1, %v847_v36 }
  0x63   :  { %1791 = vmatmul.mubr.f32.vlgmr.msra.gmra.mrb[2].mxu1 %v2248_v20  ;;  %1905 = vmatprep.subr.msk.bf16.mxu0 %vm2177_vm4, %v1903_v62  ;;  %v1404_v20 = vrot.slane %v1400_v14, %v2101_v5  ;;  %v1398_v5 = vmul.f32 %v1397_v21, %v1393_v60 }
  0x64   :  { %1914 = vmatpush3.bf16.xpose.msk.msra.mxu1 %vm2139_vm3, %v1909_v46  ;;  %1811 = vmatprep.mubr.msk.f32.mxu1 %vm2116_vm1, %v1037_v39 }
  0x65   :  { %1917 = vmatprep.subr.msk.bf16.mxu1 %vm2177_vm4, %v1915_v3  ;;  %v1405_v24 = vmul.f32 %v1404_v20, %v1393_v60 }
  0x67   :  { %v1939_v26 = vpack.c.bf16 %v1405_v24, %v1398_v5 }
  0x69   :  { %1798 = vmatmul.mubr.f32.vlgmr.msra.gmra.mrb[4].mxu0 %v2277_v35 }
  0x6a   :  { %1908 = vmatpush3.bf16.xpose.msk.msra.mxu0 %vm2177_vm4, %v1903_v62  ;;  %1804 = vmatprep.mubr.msk.f32.mxu0 %vm74_vm0, %v828_v52 }
  0x6b   :  { %1812 = vmatmul.mubr.f32.vlgmr.msra.gmra.mrb[4].mxu1 %v2288_v38  ;;  %1923 = vmatprep.subr.msk.bf16.mxu0 %vm2139_vm3, %v1921_v15 }
  0x6c   :  { %1920 = vmatpush3.bf16.xpose.msk.msra.mxu1 %vm2177_vm4, %v1915_v3  ;;  %1818 = vmatprep.mubr.msk.f32.mxu1 %vm74_vm0, %v1018_v57 }
  0x6d   :  { %1935 = vmatprep.subr.msk.bf16.mxu1 %vm2139_vm3, %v1933_v19 }
  0x71   :  { %1805 = vmatmul.mubr.f32.vlgmr.msra.gmra.mrb[4].mxu0 %v835_v53 }
  0x72   :  { %1926 = vmatpush3.bf16.xpose.msk.msra.mxu0 %vm2139_vm3, %v1921_v15  ;;  %1825 = vmatprep.mubr.msk.f32.mxu0 %vm2116_vm1, %v1227_v10 }
  0x73   :  { %1819 = vmatmul.mubr.f32.vlgmr.msra.gmra.mrb[4].mxu1 %v1025_v58  ;;  %1929 = vmatprep.subr.msk.bf16.mxu0 %vm2177_vm4, %v1927_v25 }
  0x74   :  { %1938 = vmatpush3.bf16.xpose.msk.msra.mxu1 %vm2139_vm3, %v1933_v19  ;;  %1839 = vmatprep.mubr.msk.f32.mxu1 %vm2116_vm1, %v1417_v13 }
  0x75   :  { %1941 = vmatprep.subr.msk.bf16.mxu1 %vm2177_vm4, %v1939_v26 }
  0x79   :  { %1826 = vmatmul.mubr.f32.vlgmr.msra.gmra.mrb[6].mxu0 %v1225_v9 }
  0x7a   :  { %1932 = vmatpush3.bf16.xpose.msk.msra.mxu0 %vm2177_vm4, %v1927_v25  ;;  %1832 = vmatprep.mubr.msk.f32.mxu0 %vm74_vm0, %v1208_v22 }
  0x7b   :  { %1840 = vmatmul.mubr.f32.vlgmr.msra.gmra.mrb[6].mxu1 %v1415_v12 }
  0x7c   :  { %1944 = vmatpush3.bf16.xpose.msk.msra.mxu1 %vm2177_vm4, %v1939_v26  ;;  %1846 = vmatprep.mubr.msk.f32.mxu1 %vm74_vm0, %v1398_v5 }
  0x81   :  { %1833 = vmatmul.mubr.f32.vlgmr.msra.gmra.mrb[6].mxu0 %v1215_v23 }
  0x83   :  { %1847 = vmatmul.mubr.f32.vlgmr.msra.gmra.mrb[6].mxu1 %v1405_v24 }
 0x124   :  { %v1750_v17 = vpop.f32.mrb[0].mxu0 }
 0x125   :  { %242 = vst.msk [vmem:[%s2439_s3 + $0x8] sm:$0xf] %vm241_vm5, %v1750_v17  ;;  %v230_v30 = vpop.f32.mrb[1].mxu0 }
 0x126   :  { %v1764_v27 = vpop.f32.mrb[0].mxu1  ;;  %240 = vst.msk [vmem:[%s2439_s3] sm:$0xff] %vm239_vm6, %v230_v30 }
 0x127   :  { %1600 = vst.msk [vmem:[%s2439_s3 + $0x18] sm:$0xf] %vm241_vm5, %v1764_v27  ;;  %v421_v49 = vpop.f32.mrb[1].mxu1 }
 0x128   :  { %1599 = vst.msk [vmem:[%s2439_s3 + $0x10] sm:$0xff] %vm239_vm6, %v421_v49 }
 0x134   :  { %v1778_v28 = vpop.f32.mrb[2].mxu0 }
 0x135   :  { %1612 = vst.msk [vmem:[%s2439_s3 + $0x28] sm:$0xf] %vm241_vm5, %v1778_v28  ;;  %v611_v29 = vpop.f32.mrb[3].mxu0 }
 0x136   :  { %v1792_v31 = vpop.f32.mrb[2].mxu1  ;;  %1611 = vst.msk [vmem:[%s2439_s3 + $0x20] sm:$0xff] %vm239_vm6, %v611_v29 }
 0x137   :  { %1624 = vst.msk [vmem:[%s2439_s3 + $0x38] sm:$0xf] %vm241_vm5, %v1792_v31  ;;  %v801_v32 = vpop.f32.mrb[3].mxu1 }
 0x138   :  { %1623 = vst.msk [vmem:[%s2439_s3 + $0x30] sm:$0xff] %vm239_vm6, %v801_v32 }
 0x144   :  { %v1806_v33 = vpop.f32.mrb[4].mxu0 }
 0x145   :  { %1636 = vst.msk [vmem:[%s2439_s3 + $0x48] sm:$0xf] %vm241_vm5, %v1806_v33  ;;  %v991_v34 = vpop.f32.mrb[5].mxu0 }
 0x146   :  { %v1820_v35 = vpop.f32.mrb[4].mxu1  ;;  %1635 = vst.msk [vmem:[%s2439_s3 + $0x40] sm:$0xff] %vm239_vm6, %v991_v34 }
 0x147   :  { %1648 = vst.msk [vmem:[%s2439_s3 + $0x58] sm:$0xf] %vm241_vm5, %v1820_v35  ;;  %v1181_v36 = vpop.f32.mrb[5].mxu1 }
 0x148   :  { %1647 = vst.msk [vmem:[%s2439_s3 + $0x50] sm:$0xff] %vm239_vm6, %v1181_v36 }
 0x154   :  { %v1834_v37 = vpop.f32.mrb[6].mxu0 }
 0x155   :  { %1660 = vst.msk [vmem:[%s2439_s3 + $0x68] sm:$0xf] %vm241_vm5, %v1834_v37  ;;  %v1371_v38 = vpop.f32.mrb[7].mxu0 }
 0x156   :  { %v1848_v39 = vpop.f32.mrb[6].mxu1  ;;  %1659 = vst.msk [vmem:[%s2439_s3 + $0x60] sm:$0xff] %vm239_vm6, %v1371_v38 }
 0x157   :  { %1672 = vst.msk [vmem:[%s2439_s3 + $0x78] sm:$0xf] %vm241_vm5, %v1848_v39  ;;  %v1561_v40 = vpop.f32.mrb[7].mxu1 }
 0x158   :  { %1671 = vst.msk [vmem:[%s2439_s3 + $0x70] sm:$0xff] %vm239_vm6, %v1561_v40 }
 0x159   :  { %1577 = vsyncpa [#allocation3], 1 }
 0x15a   :  { %1578 = vsyncpa [#allocation7], 1 }
 0x15b   :  { %1579 = vsyncpa [#allocation4], 1 }

</bundles_post_ra>
